<compile_context>
chip_gen: v7x
topology: tpu7x:2x2x1
jax: 0.10.0
libtpu: 0.0.40
codegen_flags: <defaults>
</compile_context>

<pallas_src>
import functools

import jax
import jax.numpy as jnp
from jax.experimental import pallas as pl
from jax.experimental.pallas import tpu as pltpu

# ----------------------------- module constants -----------------------------
FOCAL_LENGTH = 1000.0   # stored on the module but unused in forward (as in torch)
IMG_RES = 224
MIN_S = 0.1

NUM_OBJECTS = 3         # synthetic "RigidTensors" object vocabulary
N_KP = 16               # keypoints per object (8 "top" + 8 "bottom")
N_BBOX = 16             # 3D bbox corners (8 top + 8 bottom)
P_TOTAL = N_KP + N_BBOX # points processed jointly in the kernel (32)

LANE_TILE = 512         # batch elements (lanes) per grid step -> 512*32 points/step

# per-batch table row layout (24 rows, one lane per batch element)
_T_R = 0        # 9 rows: rotation, row-major
_T_K = 9        # 9 rows: intrinsics, row-major
_T_TR = 18      # 3 rows: translation xyz
_T_CT = 21      # 3 rows: perspective cam translation xyz
_N_TAB_ROWS = 24
_N_OUT_FIELDS = 8       # p3x p3y p3z | pcx pcy pcz | u v


def _round_up(x, m):
    return ((x + m - 1) // m) * m


# ------------------------------- JAX glue ------------------------------------
def axis_angle_to_matrix(rot):
    """Rodrigues formula, (B,3) axis-angle -> (B,3,3) rotation matrix."""
    theta = jnp.sqrt(jnp.sum(rot * rot, axis=-1) + 1e-12)            # (B,)
    k = rot / theta[:, None]                                         # (B,3)
    kx, ky, kz = k[:, 0], k[:, 1], k[:, 2]
    zero = jnp.zeros_like(kx)
    Kskew = jnp.stack(
        [
            jnp.stack([zero, -kz, ky], -1),
            jnp.stack([kz, zero, -kx], -1),
            jnp.stack([-ky, kx, zero], -1),
        ],
        axis=-2,
    )                                                                # (B,3,3)
    eye = jnp.eye(3, dtype=rot.dtype)[None]
    s = jnp.sin(theta)[:, None, None]
    c = jnp.cos(theta)[:, None, None]
    return eye + s * Kskew + (1.0 - c) * jnp.matmul(Kskew, Kskew)


# ------------------------------ Pallas kernel --------------------------------
def _rigid_head_kernel(tab_ref, can_ref, out_ref, *, img_res, n_pts):
    """One lane-tile (TILE batches x n_pts points) of rigid transform + projection.

    tab_ref: (24,      TILE) f32  per-batch scalars: R(9) | K(9) | transl(3) | cam_t(3)
    can_ref: (3*n_pts, TILE) f32  canonical coords: x rows | y rows | z rows
    out_ref: (8*n_pts, TILE) f32  p3x | p3y | p3z | pcx | pcy | pcz | u | v
    """
    P = n_pts
    scale = 2.0 / img_res

    def scal(i):
        # (1, TILE) per-batch scalar row, read straight from the ref at point of use;
        # the elementwise op broadcasts it across the 8 active point-sublanes.
        return tab_ref[i:i + 1, :]

    # Process points 8 sublanes at a time: every operand, FMA and store is a dense
    # (8, TILE) tile (full VPU occupancy, unmasked vector stores).
    for g in range(P // 8):
        lo, hi = g * 8, g * 8 + 8
        cx = can_ref[0 * P + lo:0 * P + hi, :]
        cy = can_ref[1 * P + lo:1 * P + hi, :]
        cz = can_ref[2 * P + lo:2 * P + hi, :]

        # ---- rigid transform: pts3d = R @ can + transl (9 scalar-times-tile FMAs)
        p3x = scal(_T_R + 0) * cx + scal(_T_R + 1) * cy + scal(_T_R + 2) * cz + scal(_T_TR + 0)
        p3y = scal(_T_R + 3) * cx + scal(_T_R + 4) * cy + scal(_T_R + 5) * cz + scal(_T_TR + 1)
        p3z = scal(_T_R + 6) * cx + scal(_T_R + 7) * cy + scal(_T_R + 8) * cz + scal(_T_TR + 2)

        # ---- shift to camera frame
        pcx = p3x + scal(_T_CT + 0)
        pcy = p3y + scal(_T_CT + 1)
        pcz = p3z + scal(_T_CT + 2)

        # ---- intrinsic projection (general 3x3 K)
        pu = scal(_T_K + 0) * pcx + scal(_T_K + 1) * pcy + scal(_T_K + 2) * pcz
        pv = scal(_T_K + 3) * pcx + scal(_T_K + 4) * pcy + scal(_T_K + 5) * pcz
        pw = scal(_T_K + 6) * pcx + scal(_T_K + 7) * pcy + scal(_T_K + 8) * pcz

        # ---- perspective divide + normalize to [-1, 1]
        inv_w = pl.reciprocal(pw, approx=False)
        u = pu * inv_w * scale - 1.0
        v = pv * inv_w * scale - 1.0

        # ---- per-field dense (8, TILE) stores, no sublane concatenate
        out_ref[0 * P + lo:0 * P + hi, :] = p3x
        out_ref[1 * P + lo:1 * P + hi, :] = p3y
        out_ref[2 * P + lo:2 * P + hi, :] = p3z
        out_ref[3 * P + lo:3 * P + hi, :] = pcx
        out_ref[4 * P + lo:4 * P + hi, :] = pcy
        out_ref[5 * P + lo:5 * P + hi, :] = pcz
        out_ref[6 * P + lo:6 * P + hi, :] = u
        out_ref[7 * P + lo:7 * P + hi, :] = v


# ------------------------------ host wrapper ---------------------------------
def rigid_head_forward(
    rot,              # (B, 3) axis-angle
    query_idx,        # (B,)   int32 object indices (stand-in for query_names)
    cam,              # (B, 3) weak-perspective cam [s, tx, ty]
    K,                # (B, 3, 3) intrinsics
    canonical_kp3d,   # (NUM_OBJECTS, N_KP, 3)   synthetic RigidTensors kps
    canonical_bbox3d, # (NUM_OBJECTS, N_BBOX, 3) synthetic RigidTensors bbox
    transl=None,      # (B, 3) or None
    focal_length=FOCAL_LENGTH,
    img_res=IMG_RES,
):
    del focal_length  # unused in the original forward as well
    B = rot.shape[0]
    f32 = jnp.float32

    rot = rot.astype(f32)
    cam = cam.astype(f32)
    Kf = K.astype(f32)

    R = axis_angle_to_matrix(rot)                                     # (B,3,3)
    kp_can = jnp.take(canonical_kp3d.astype(f32), query_idx, axis=0)  # (B,N_KP,3)
    bb_can = jnp.take(canonical_bbox3d.astype(f32), query_idx, axis=0)
    can = jnp.concatenate([kp_can, bb_can], axis=1)                   # (B,P,3)
    P = can.shape[1]
    assert P % 8 == 0, "point count must be a multiple of 8 sublanes"

    t = (transl if transl is not None else jnp.zeros((B, 3), f32)).astype(f32)

    # ---- weak-perspective -> perspective cam translation (trivial scalar math)
    avg_f = (Kf[:, 0, 0] + Kf[:, 1, 1]) * 0.5                         # (B,)
    s = jnp.maximum(cam[:, 0], MIN_S)
    cam_t = jnp.stack(
        [cam[:, 1], cam[:, 2], 2.0 * avg_f / (img_res * s + 1e-9)], axis=-1
    )                                                                 # (B,3)

    # ---- lane tiling over the batch axis
    # Note: for very small B a fused XLA path would match the kernel; we always run
    # the kernel here so the Pallas path is exercised.
    b128 = _round_up(B, 128)
    tile = min(LANE_TILE, b128)
    if b128 >= 256 and b128 <= tile:      # v7x megacore: keep >= 2 grid steps
        tile = _round_up(b128 // 2, 128)
    b_pad = _round_up(B, tile)
    grid = (b_pad // tile,)

    # ---- compact per-batch table (24, B): no per-point replication
    tab = jnp.concatenate([R.reshape(B, 9), Kf.reshape(B, 9), t, cam_t], axis=1).T
    # ---- canonical coords, points on sublanes / batch on lanes: (3*P, B)
    can_flat = jnp.transpose(can, (2, 1, 0)).reshape(3 * P, B)

    pad_n = b_pad - B
    if pad_n:
        # pad with K[2,2]=1 and cam_t_z=1 so the perspective divide stays finite
        pad_col = (
            jnp.zeros((_N_TAB_ROWS,), f32).at[_T_K + 8].set(1.0).at[_T_CT + 2].set(1.0)
        )
        tab = jnp.concatenate(
            [tab, jnp.broadcast_to(pad_col[:, None], (_N_TAB_ROWS, pad_n))], axis=1
        )
        can_flat = jnp.pad(can_flat, ((0, 0), (0, pad_n)))

    kernel = functools.partial(_rigid_head_kernel, img_res=float(img_res), n_pts=P)

    out = pl.pallas_call(
        kernel,
        out_shape=jax.ShapeDtypeStruct((_N_OUT_FIELDS * P, b_pad), f32),
        grid=grid,
        in_specs=[
            pl.BlockSpec((_N_TAB_ROWS, tile), lambda i: (0, i)),
            pl.BlockSpec((3 * P, tile), lambda i: (0, i)),
        ],
        out_specs=pl.BlockSpec((_N_OUT_FIELDS * P, tile), lambda i: (0, i)),
        compiler_params=pltpu.CompilerParams(dimension_semantics=("parallel",)),
    )(tab, can_flat)

    # ---- unpack (8*P, B) lane-dense output back to (B, P, C)
    out = out[:, :B].reshape(_N_OUT_FIELDS, P, B)
    pts3d = jnp.transpose(out[0:3], (2, 1, 0))                        # (B,P,3)
    pts3d_cam = jnp.transpose(out[3:6], (2, 1, 0))                    # (B,P,3)
    pts2d = jnp.transpose(out[6:8], (2, 1, 0))                        # (B,P,2)

    kp3d, bbox3d = pts3d[:, :N_KP], pts3d[:, N_KP:]
    kp3d_cam, bbox3d_cam = pts3d_cam[:, :N_KP], pts3d_cam[:, N_KP:]
    kp2d, bbox2d = pts2d[:, :N_KP], pts2d[:, N_KP:]
    num_kps = kp2d.shape[1] // 2

    output = {
        "rot": rot,
        "cam_t.wp": cam,
        "cam_t": cam_t,
        "kp3d": kp3d,
        "bbox3d": bbox3d,
        "bbox3d.cam": bbox3d_cam,
        "kp3d.cam": kp3d_cam,
        "kp2d.norm": kp2d,
        "kp2d.norm.t": kp2d[:, :num_kps],
        "kp2d.norm.b": kp2d[:, num_kps:],
        "bbox2d.norm.t": bbox2d[:, :8],
        "bbox2d.norm.b": bbox2d[:, 8:],
    }
    if transl is not None:
        output["transl"] = transl
    # TODO(synk): fwd_meshes branch (v/v_len/f/f_len variable-length mesh tensors)
    # from RigidTensors has no clean fixed-shape Pallas equivalent and is omitted.
    return output


# ------------------------------ pure-JAX reference ---------------------------
def _reference(rot, query_idx, cam, K, kp_can_all, bb_can_all, transl, img_res):
    R = axis_angle_to_matrix(rot)
    kp_can = jnp.take(kp_can_all, query_idx, axis=0)
    bb_can = jnp.take(bb_can_all, query_idx, axis=0)
    kp3d = jnp.einsum("bij,bnj->bni", R, kp_can) + transl[:, None, :]
    bbox3d = jnp.einsum("bij,bnj->bni", R, bb_can) + transl[:, None, :]
    avg_f = (K[:, 0, 0] + K[:, 1, 1]) / 2.0
    s = jnp.maximum(cam[:, 0], MIN_S)
    cam_t = jnp.stack([cam[:, 1], cam[:, 2], 2.0 * avg_f / (img_res * s + 1e-9)], -1)
    kp3d_cam = kp3d + cam_t[:, None, :]
    bbox3d_cam = bbox3d + cam_t[:, None, :]

    def proj(pts):
        p = jnp.einsum("bij,bnj->bni", K, pts)
        return 2.0 * (p[..., :2] / p[..., 2:3]) / img_res - 1.0

    return dict(
        kp3d=kp3d, bbox3d=bbox3d, kp3d_cam=kp3d_cam, bbox3d_cam=bbox3d_cam,
        kp2d=proj(kp3d_cam), bbox2d=proj(bbox3d_cam), cam_t=cam_t,
    )


# ----------------------------------- main ------------------------------------
if __name__ == "__main__":
    key = jax.random.PRNGKey(0)
    k_rot, k_cam, k_transl, k_kp, k_bb = jax.random.split(key, 5)

    B = 2
    rot = jax.random.normal(k_rot, (B, 3), jnp.float32) * 0.5
    cam = jnp.array([[0.9, 0.02, -0.05], [1.2, -0.10, 0.08]], jnp.float32)
    transl = jax.random.normal(k_transl, (B, 3), jnp.float32) * 0.05
    K = jnp.stack(
        [
            jnp.array([[500.0, 0.0, 112.0], [0.0, 505.0, 112.0], [0.0, 0.0, 1.0]]),
            jnp.array([[480.0, 0.0, 110.0], [0.0, 490.0, 115.0], [0.0, 0.0, 1.0]]),
        ]
    ).astype(jnp.float32)

    # Deterministic synthetic "RigidTensors" canonical geometry (no checkpoint).
    canonical_kp3d = jax.random.normal(k_kp, (NUM_OBJECTS, N_KP, 3), jnp.float32) * 0.1
    canonical_bbox3d = (
        jax.random.normal(k_bb, (NUM_OBJECTS, N_BBOX, 3), jnp.float32) * 0.1
    )

    # query_names -> integer object indices
    name_to_idx = {"obj_a": 0, "obj_b": 1, "obj_c": 2}
    query_names = ["obj_a", "obj_c"]
    query_idx = jnp.array([name_to_idx[n] for n in query_names], jnp.int32)

    out = rigid_head_forward(
        rot, query_idx, cam, K, canonical_kp3d, canonical_bbox3d, transl=transl
    )
    jax.tree_util.tree_map(jax.block_until_ready, out)

    ref = _reference(
        rot, query_idx, cam, K, canonical_kp3d, canonical_bbox3d, transl, IMG_RES
    )
    checks = [
        ("kp3d", "kp3d"), ("bbox3d", "bbox3d"), ("kp3d.cam", "kp3d_cam"),
        ("bbox3d.cam", "bbox3d_cam"), ("kp2d.norm", "kp2d"), ("cam_t", "cam_t"),
    ]
    for out_key, ref_key in checks:
        assert jnp.allclose(out[out_key], ref[ref_key], rtol=1e-4, atol=1e-4), out_key
    assert jnp.allclose(
        jnp.concatenate([out["bbox2d.norm.t"], out["bbox2d.norm.b"]], axis=1),
        ref["bbox2d"], rtol=1e-4, atol=1e-4,
    )

    print("KERNEL_OK")
</pallas_src>

<mosaic_0001>
module attributes {stable_mosaic.version = 11 : i64} {
  func.func @_rigid_head_kernel(%arg0: i32, %arg1: memref<24x128xf32, #tpu.memory_space<vmem>>, %arg2: memref<96x128xf32, #tpu.memory_space<vmem>>, %arg3: memref<256x128xf32, #tpu.memory_space<vmem>>) attributes {dimension_semantics = [#tpu.dimension_semantics<parallel>], iteration_bounds = array<i64: 1>, scalar_prefetch = 0 : i64, scratch_operands = 0 : i64, tpu.core_type = #tpu.core_type<tc>, window_params = [{transform_indices = @transform_0, window_bounds = array<i64: 24, 128>}, {transform_indices = @transform_1, window_bounds = array<i64: 96, 128>}, {transform_indices = @transform_2, window_bounds = array<i64: 256, 128>}]} {
    %c0 = arith.constant 0 : index
    %c0_0 = arith.constant 0 : index
    %0 = vector.load %arg2[%c0, %c0_0] : memref<96x128xf32, #tpu.memory_space<vmem>>, vector<8x128xf32>
    %c32 = arith.constant 32 : index
    %c0_1 = arith.constant 0 : index
    %1 = vector.load %arg2[%c32, %c0_1] : memref<96x128xf32, #tpu.memory_space<vmem>>, vector<8x128xf32>
    %c64 = arith.constant 64 : index
    %c0_2 = arith.constant 0 : index
    %2 = vector.load %arg2[%c64, %c0_2] : memref<96x128xf32, #tpu.memory_space<vmem>>, vector<8x128xf32>
    %c0_3 = arith.constant 0 : index
    %c0_4 = arith.constant 0 : index
    %3 = vector.load %arg1[%c0_3, %c0_4] : memref<24x128xf32, #tpu.memory_space<vmem>>, vector<1x128xf32>
    %4 = vector.broadcast %3 : vector<1x128xf32> to vector<8x128xf32>
    %5 = arith.mulf %4, %0 : vector<8x128xf32>
    %c1 = arith.constant 1 : index
    %c0_5 = arith.constant 0 : index
    %6 = vector.load %arg1[%c1, %c0_5] : memref<24x128xf32, #tpu.memory_space<vmem>>, vector<1x128xf32>
    %7 = vector.broadcast %6 : vector<1x128xf32> to vector<8x128xf32>
    %8 = arith.mulf %7, %1 : vector<8x128xf32>
    %9 = arith.addf %5, %8 : vector<8x128xf32>
    %c2 = arith.constant 2 : index
    %c0_6 = arith.constant 0 : index
    %10 = vector.load %arg1[%c2, %c0_6] : memref<24x128xf32, #tpu.memory_space<vmem>>, vector<1x128xf32>
    %11 = vector.broadcast %10 : vector<1x128xf32> to vector<8x128xf32>
    %12 = arith.mulf %11, %2 : vector<8x128xf32>
    %13 = arith.addf %9, %12 : vector<8x128xf32>
    %c18 = arith.constant 18 : index
    %c0_7 = arith.constant 0 : index
    %14 = vector.load %arg1[%c18, %c0_7] : memref<24x128xf32, #tpu.memory_space<vmem>>, vector<1x128xf32>
    %15 = vector.broadcast %14 : vector<1x128xf32> to vector<8x128xf32>
    %16 = arith.addf %13, %15 : vector<8x128xf32>
    %c3 = arith.constant 3 : index
    %c0_8 = arith.constant 0 : index
    %17 = vector.load %arg1[%c3, %c0_8] : memref<24x128xf32, #tpu.memory_space<vmem>>, vector<1x128xf32>
    %18 = vector.broadcast %17 : vector<1x128xf32> to vector<8x128xf32>
    %19 = arith.mulf %18, %0 : vector<8x128xf32>
    %c4 = arith.constant 4 : index
    %c0_9 = arith.constant 0 : index
    %20 = vector.load %arg1[%c4, %c0_9] : memref<24x128xf32, #tpu.memory_space<vmem>>, vector<1x128xf32>
    %21 = vector.broadcast %20 : vector<1x128xf32> to vector<8x128xf32>
    %22 = arith.mulf %21, %1 : vector<8x128xf32>
    %23 = arith.addf %19, %22 : vector<8x128xf32>
    %c5 = arith.constant 5 : index
    %c0_10 = arith.constant 0 : index
    %24 = vector.load %arg1[%c5, %c0_10] : memref<24x128xf32, #tpu.memory_space<vmem>>, vector<1x128xf32>
    %25 = vector.broadcast %24 : vector<1x128xf32> to vector<8x128xf32>
    %26 = arith.mulf %25, %2 : vector<8x128xf32>
    %27 = arith.addf %23, %26 : vector<8x128xf32>
    %c19 = arith.constant 19 : index
    %c0_11 = arith.constant 0 : index
    %28 = vector.load %arg1[%c19, %c0_11] : memref<24x128xf32, #tpu.memory_space<vmem>>, vector<1x128xf32>
    %29 = vector.broadcast %28 : vector<1x128xf32> to vector<8x128xf32>
    %30 = arith.addf %27, %29 : vector<8x128xf32>
    %c6 = arith.constant 6 : index
    %c0_12 = arith.constant 0 : index
    %31 = vector.load %arg1[%c6, %c0_12] : memref<24x128xf32, #tpu.memory_space<vmem>>, vector<1x128xf32>
    %32 = vector.broadcast %31 : vector<1x128xf32> to vector<8x128xf32>
    %33 = arith.mulf %32, %0 : vector<8x128xf32>
    %c7 = arith.constant 7 : index
    %c0_13 = arith.constant 0 : index
    %34 = vector.load %arg1[%c7, %c0_13] : memref<24x128xf32, #tpu.memory_space<vmem>>, vector<1x128xf32>
    %35 = vector.broadcast %34 : vector<1x128xf32> to vector<8x128xf32>
    %36 = arith.mulf %35, %1 : vector<8x128xf32>
    %37 = arith.addf %33, %36 : vector<8x128xf32>
    %c8 = arith.constant 8 : index
    %c0_14 = arith.constant 0 : index
    %38 = vector.load %arg1[%c8, %c0_14] : memref<24x128xf32, #tpu.memory_space<vmem>>, vector<1x128xf32>
    %39 = vector.broadcast %38 : vector<1x128xf32> to vector<8x128xf32>
    %40 = arith.mulf %39, %2 : vector<8x128xf32>
    %41 = arith.addf %37, %40 : vector<8x128xf32>
    %c20 = arith.constant 20 : index
    %c0_15 = arith.constant 0 : index
    %42 = vector.load %arg1[%c20, %c0_15] : memref<24x128xf32, #tpu.memory_space<vmem>>, vector<1x128xf32>
    %43 = vector.broadcast %42 : vector<1x128xf32> to vector<8x128xf32>
    %44 = arith.addf %41, %43 : vector<8x128xf32>
    %c21 = arith.constant 21 : index
    %c0_16 = arith.constant 0 : index
    %45 = vector.load %arg1[%c21, %c0_16] : memref<24x128xf32, #tpu.memory_space<vmem>>, vector<1x128xf32>
    %46 = vector.broadcast %45 : vector<1x128xf32> to vector<8x128xf32>
    %47 = arith.addf %16, %46 : vector<8x128xf32>
    %c22 = arith.constant 22 : index
    %c0_17 = arith.constant 0 : index
    %48 = vector.load %arg1[%c22, %c0_17] : memref<24x128xf32, #tpu.memory_space<vmem>>, vector<1x128xf32>
    %49 = vector.broadcast %48 : vector<1x128xf32> to vector<8x128xf32>
    %50 = arith.addf %30, %49 : vector<8x128xf32>
    %c23 = arith.constant 23 : index
    %c0_18 = arith.constant 0 : index
    %51 = vector.load %arg1[%c23, %c0_18] : memref<24x128xf32, #tpu.memory_space<vmem>>, vector<1x128xf32>
    %52 = vector.broadcast %51 : vector<1x128xf32> to vector<8x128xf32>
    %53 = arith.addf %44, %52 : vector<8x128xf32>
    %c9 = arith.constant 9 : index
    %c0_19 = arith.constant 0 : index
    %54 = vector.load %arg1[%c9, %c0_19] : memref<24x128xf32, #tpu.memory_space<vmem>>, vector<1x128xf32>
    %55 = vector.broadcast %54 : vector<1x128xf32> to vector<8x128xf32>
    %56 = arith.mulf %55, %47 : vector<8x128xf32>
    %c10 = arith.constant 10 : index
    %c0_20 = arith.constant 0 : index
    %57 = vector.load %arg1[%c10, %c0_20] : memref<24x128xf32, #tpu.memory_space<vmem>>, vector<1x128xf32>
    %58 = vector.broadcast %57 : vector<1x128xf32> to vector<8x128xf32>
    %59 = arith.mulf %58, %50 : vector<8x128xf32>
    %60 = arith.addf %56, %59 : vector<8x128xf32>
    %c11 = arith.constant 11 : index
    %c0_21 = arith.constant 0 : index
    %61 = vector.load %arg1[%c11, %c0_21] : memref<24x128xf32, #tpu.memory_space<vmem>>, vector<1x128xf32>
    %62 = vector.broadcast %61 : vector<1x128xf32> to vector<8x128xf32>
    %63 = arith.mulf %62, %53 : vector<8x128xf32>
    %64 = arith.addf %60, %63 : vector<8x128xf32>
    %c12 = arith.constant 12 : index
    %c0_22 = arith.constant 0 : index
    %65 = vector.load %arg1[%c12, %c0_22] : memref<24x128xf32, #tpu.memory_space<vmem>>, vector<1x128xf32>
    %66 = vector.broadcast %65 : vector<1x128xf32> to vector<8x128xf32>
    %67 = arith.mulf %66, %47 : vector<8x128xf32>
    %c13 = arith.constant 13 : index
    %c0_23 = arith.constant 0 : index
    %68 = vector.load %arg1[%c13, %c0_23] : memref<24x128xf32, #tpu.memory_space<vmem>>, vector<1x128xf32>
    %69 = vector.broadcast %68 : vector<1x128xf32> to vector<8x128xf32>
    %70 = arith.mulf %69, %50 : vector<8x128xf32>
    %71 = arith.addf %67, %70 : vector<8x128xf32>
    %c14 = arith.constant 14 : index
    %c0_24 = arith.constant 0 : index
    %72 = vector.load %arg1[%c14, %c0_24] : memref<24x128xf32, #tpu.memory_space<vmem>>, vector<1x128xf32>
    %73 = vector.broadcast %72 : vector<1x128xf32> to vector<8x128xf32>
    %74 = arith.mulf %73, %53 : vector<8x128xf32>
    %75 = arith.addf %71, %74 : vector<8x128xf32>
    %c15 = arith.constant 15 : index
    %c0_25 = arith.constant 0 : index
    %76 = vector.load %arg1[%c15, %c0_25] : memref<24x128xf32, #tpu.memory_space<vmem>>, vector<1x128xf32>
    %77 = vector.broadcast %76 : vector<1x128xf32> to vector<8x128xf32>
    %78 = arith.mulf %77, %47 : vector<8x128xf32>
    %c16 = arith.constant 16 : index
    %c0_26 = arith.constant 0 : index
    %79 = vector.load %arg1[%c16, %c0_26] : memref<24x128xf32, #tpu.memory_space<vmem>>, vector<1x128xf32>
    %80 = vector.broadcast %79 : vector<1x128xf32> to vector<8x128xf32>
    %81 = arith.mulf %80, %50 : vector<8x128xf32>
    %82 = arith.addf %78, %81 : vector<8x128xf32>
    %c17 = arith.constant 17 : index
    %c0_27 = arith.constant 0 : index
    %83 = vector.load %arg1[%c17, %c0_27] : memref<24x128xf32, #tpu.memory_space<vmem>>, vector<1x128xf32>
    %84 = vector.broadcast %83 : vector<1x128xf32> to vector<8x128xf32>
    %85 = arith.mulf %84, %53 : vector<8x128xf32>
    %86 = arith.addf %82, %85 : vector<8x128xf32>
    %87 = tpu.reciprocal %86 : vector<8x128xf32> -> vector<8x128xf32>
    %88 = arith.mulf %64, %87 : vector<8x128xf32>
    %cst = arith.constant 0.00892857183 : f32
    %89 = vector.broadcast %cst : f32 to vector<8x128xf32>
    %90 = arith.mulf %88, %89 : vector<8x128xf32>
    %cst_28 = arith.constant 1.000000e+00 : f32
    %91 = vector.broadcast %cst_28 : f32 to vector<8x128xf32>
    %92 = arith.subf %90, %91 : vector<8x128xf32>
    %93 = arith.mulf %75, %87 : vector<8x128xf32>
    %cst_29 = arith.constant 0.00892857183 : f32
    %94 = vector.broadcast %cst_29 : f32 to vector<8x128xf32>
    %95 = arith.mulf %93, %94 : vector<8x128xf32>
    %cst_30 = arith.constant 1.000000e+00 : f32
    %96 = vector.broadcast %cst_30 : f32 to vector<8x128xf32>
    %97 = arith.subf %95, %96 : vector<8x128xf32>
    %c0_31 = arith.constant 0 : index
    %c0_32 = arith.constant 0 : index
    %98 = vector.load %arg3[%c0_31, %c0_32] : memref<256x128xf32, #tpu.memory_space<vmem>>, vector<8x128xf32>
    tpu.vector_store %arg3[%c0_31, %c0_32], %16 {strides = array<i32>} : memref<256x128xf32, #tpu.memory_space<vmem>>, vector<8x128xf32>,
    %c32_33 = arith.constant 32 : index
    %c0_34 = arith.constant 0 : index
    %99 = vector.load %arg3[%c32_33, %c0_34] : memref<256x128xf32, #tpu.memory_space<vmem>>, vector<8x128xf32>
    tpu.vector_store %arg3[%c32_33, %c0_34], %30 {strides = array<i32>} : memref<256x128xf32, #tpu.memory_space<vmem>>, vector<8x128xf32>,
    %c64_35 = arith.constant 64 : index
    %c0_36 = arith.constant 0 : index
    %100 = vector.load %arg3[%c64_35, %c0_36] : memref<256x128xf32, #tpu.memory_space<vmem>>, vector<8x128xf32>
    tpu.vector_store %arg3[%c64_35, %c0_36], %44 {strides = array<i32>} : memref<256x128xf32, #tpu.memory_space<vmem>>, vector<8x128xf32>,
    %c96 = arith.constant 96 : index
    %c0_37 = arith.constant 0 : index
    %101 = vector.load %arg3[%c96, %c0_37] : memref<256x128xf32, #tpu.memory_space<vmem>>, vector<8x128xf32>
    tpu.vector_store %arg3[%c96, %c0_37], %47 {strides = array<i32>} : memref<256x128xf32, #tpu.memory_space<vmem>>, vector<8x128xf32>,
    %c128 = arith.constant 128 : index
    %c0_38 = arith.constant 0 : index
    %102 = vector.load %arg3[%c128, %c0_38] : memref<256x128xf32, #tpu.memory_space<vmem>>, vector<8x128xf32>
    tpu.vector_store %arg3[%c128, %c0_38], %50 {strides = array<i32>} : memref<256x128xf32, #tpu.memory_space<vmem>>, vector<8x128xf32>,
    %c160 = arith.constant 160 : index
    %c0_39 = arith.constant 0 : index
    %103 = vector.load %arg3[%c160, %c0_39] : memref<256x128xf32, #tpu.memory_space<vmem>>, vector<8x128xf32>
    tpu.vector_store %arg3[%c160, %c0_39], %53 {strides = array<i32>} : memref<256x128xf32, #tpu.memory_space<vmem>>, vector<8x128xf32>,
    %c192 = arith.constant 192 : index
    %c0_40 = arith.constant 0 : index
    %104 = vector.load %arg3[%c192, %c0_40] : memref<256x128xf32, #tpu.memory_space<vmem>>, vector<8x128xf32>
    tpu.vector_store %arg3[%c192, %c0_40], %92 {strides = array<i32>} : memref<256x128xf32, #tpu.memory_space<vmem>>, vector<8x128xf32>,
    %c224 = arith.constant 224 : index
    %c0_41 = arith.constant 0 : index
    %105 = vector.load %arg3[%c224, %c0_41] : memref<256x128xf32, #tpu.memory_space<vmem>>, vector<8x128xf32>
    tpu.vector_store %arg3[%c224, %c0_41], %97 {strides = array<i32>} : memref<256x128xf32, #tpu.memory_space<vmem>>, vector<8x128xf32>,
    %c8_42 = arith.constant 8 : index
    %c0_43 = arith.constant 0 : index
    %106 = vector.load %arg2[%c8_42, %c0_43] : memref<96x128xf32, #tpu.memory_space<vmem>>, vector<8x128xf32>
    %c40 = arith.constant 40 : index
    %c0_44 = arith.constant 0 : index
    %107 = vector.load %arg2[%c40, %c0_44] : memref<96x128xf32, #tpu.memory_space<vmem>>, vector<8x128xf32>
    %c72 = arith.constant 72 : index
    %c0_45 = arith.constant 0 : index
    %108 = vector.load %arg2[%c72, %c0_45] : memref<96x128xf32, #tpu.memory_space<vmem>>, vector<8x128xf32>
    %c0_46 = arith.constant 0 : index
    %c0_47 = arith.constant 0 : index
    %109 = vector.load %arg1[%c0_46, %c0_47] : memref<24x128xf32, #tpu.memory_space<vmem>>, vector<1x128xf32>
    %110 = vector.broadcast %109 : vector<1x128xf32> to vector<8x128xf32>
    %111 = arith.mulf %110, %106 : vector<8x128xf32>
    %c1_48 = arith.constant 1 : index
    %c0_49 = arith.constant 0 : index
    %112 = vector.load %arg1[%c1_48, %c0_49] : memref<24x128xf32, #tpu.memory_space<vmem>>, vector<1x128xf32>
    %113 = vector.broadcast %112 : vector<1x128xf32> to vector<8x128xf32>
    %114 = arith.mulf %113, %107 : vector<8x128xf32>
    %115 = arith.addf %111, %114 : vector<8x128xf32>
    %c2_50 = arith.constant 2 : index
    %c0_51 = arith.constant 0 : index
    %116 = vector.load %arg1[%c2_50, %c0_51] : memref<24x128xf32, #tpu.memory_space<vmem>>, vector<1x128xf32>
    %117 = vector.broadcast %116 : vector<1x128xf32> to vector<8x128xf32>
    %118 = arith.mulf %117, %108 : vector<8x128xf32>
    %119 = arith.addf %115, %118 : vector<8x128xf32>
    %c18_52 = arith.constant 18 : index
    %c0_53 = arith.constant 0 : index
    %120 = vector.load %arg1[%c18_52, %c0_53] : memref<24x128xf32, #tpu.memory_space<vmem>>, vector<1x128xf32>
    %121 = vector.broadcast %120 : vector<1x128xf32> to vector<8x128xf32>
    %122 = arith.addf %119, %121 : vector<8x128xf32>
    %c3_54 = arith.constant 3 : index
    %c0_55 = arith.constant 0 : index
    %123 = vector.load %arg1[%c3_54, %c0_55] : memref<24x128xf32, #tpu.memory_space<vmem>>, vector<1x128xf32>
    %124 = vector.broadcast %123 : vector<1x128xf32> to vector<8x128xf32>
    %125 = arith.mulf %124, %106 : vector<8x128xf32>
    %c4_56 = arith.constant 4 : index
    %c0_57 = arith.constant 0 : index
    %126 = vector.load %arg1[%c4_56, %c0_57] : memref<24x128xf32, #tpu.memory_space<vmem>>, vector<1x128xf32>
    %127 = vector.broadcast %126 : vector<1x128xf32> to vector<8x128xf32>
    %128 = arith.mulf %127, %107 : vector<8x128xf32>
    %129 = arith.addf %125, %128 : vector<8x128xf32>
    %c5_58 = arith.constant 5 : index
    %c0_59 = arith.constant 0 : index
    %130 = vector.load %arg1[%c5_58, %c0_59] : memref<24x128xf32, #tpu.memory_space<vmem>>, vector<1x128xf32>
    %131 = vector.broadcast %130 : vector<1x128xf32> to vector<8x128xf32>
    %132 = arith.mulf %131, %108 : vector<8x128xf32>
    %133 = arith.addf %129, %132 : vector<8x128xf32>
    %c19_60 = arith.constant 19 : index
    %c0_61 = arith.constant 0 : index
    %134 = vector.load %arg1[%c19_60, %c0_61] : memref<24x128xf32, #tpu.memory_space<vmem>>, vector<1x128xf32>
    %135 = vector.broadcast %134 : vector<1x128xf32> to vector<8x128xf32>
    %136 = arith.addf %133, %135 : vector<8x128xf32>
    %c6_62 = arith.constant 6 : index
    %c0_63 = arith.constant 0 : index
    %137 = vector.load %arg1[%c6_62, %c0_63] : memref<24x128xf32, #tpu.memory_space<vmem>>, vector<1x128xf32>
    %138 = vector.broadcast %137 : vector<1x128xf32> to vector<8x128xf32>
    %139 = arith.mulf %138, %106 : vector<8x128xf32>
    %c7_64 = arith.constant 7 : index
    %c0_65 = arith.constant 0 : index
    %140 = vector.load %arg1[%c7_64, %c0_65] : memref<24x128xf32, #tpu.memory_space<vmem>>, vector<1x128xf32>
    %141 = vector.broadcast %140 : vector<1x128xf32> to vector<8x128xf32>
    %142 = arith.mulf %141, %107 : vector<8x128xf32>
    %143 = arith.addf %139, %142 : vector<8x128xf32>
    %c8_66 = arith.constant 8 : index
    %c0_67 = arith.constant 0 : index
    %144 = vector.load %arg1[%c8_66, %c0_67] : memref<24x128xf32, #tpu.memory_space<vmem>>, vector<1x128xf32>
    %145 = vector.broadcast %144 : vector<1x128xf32> to vector<8x128xf32>
    %146 = arith.mulf %145, %108 : vector<8x128xf32>
    %147 = arith.addf %143, %146 : vector<8x128xf32>
    %c20_68 = arith.constant 20 : index
    %c0_69 = arith.constant 0 : index
    %148 = vector.load %arg1[%c20_68, %c0_69] : memref<24x128xf32, #tpu.memory_space<vmem>>, vector<1x128xf32>
    %149 = vector.broadcast %148 : vector<1x128xf32> to vector<8x128xf32>
    %150 = arith.addf %147, %149 : vector<8x128xf32>
    %c21_70 = arith.constant 21 : index
    %c0_71 = arith.constant 0 : index
    %151 = vector.load %arg1[%c21_70, %c0_71] : memref<24x128xf32, #tpu.memory_space<vmem>>, vector<1x128xf32>
    %152 = vector.broadcast %151 : vector<1x128xf32> to vector<8x128xf32>
    %153 = arith.addf %122, %152 : vector<8x128xf32>
    %c22_72 = arith.constant 22 : index
    %c0_73 = arith.constant 0 : index
    %154 = vector.load %arg1[%c22_72, %c0_73] : memref<24x128xf32, #tpu.memory_space<vmem>>, vector<1x128xf32>
    %155 = vector.broadcast %154 : vector<1x128xf32> to vector<8x128xf32>
    %156 = arith.addf %136, %155 : vector<8x128xf32>
    %c23_74 = arith.constant 23 : index
    %c0_75 = arith.constant 0 : index
    %157 = vector.load %arg1[%c23_74, %c0_75] : memref<24x128xf32, #tpu.memory_space<vmem>>, vector<1x128xf32>
    %158 = vector.broadcast %157 : vector<1x128xf32> to vector<8x128xf32>
    %159 = arith.addf %150, %158 : vector<8x128xf32>
    %c9_76 = arith.constant 9 : index
    %c0_77 = arith.constant 0 : index
    %160 = vector.load %arg1[%c9_76, %c0_77] : memref<24x128xf32, #tpu.memory_space<vmem>>, vector<1x128xf32>
    %161 = vector.broadcast %160 : vector<1x128xf32> to vector<8x128xf32>
    %162 = arith.mulf %161, %153 : vector<8x128xf32>
    %c10_78 = arith.constant 10 : index
    %c0_79 = arith.constant 0 : index
    %163 = vector.load %arg1[%c10_78, %c0_79] : memref<24x128xf32, #tpu.memory_space<vmem>>, vector<1x128xf32>
    %164 = vector.broadcast %163 : vector<1x128xf32> to vector<8x128xf32>
    %165 = arith.mulf %164, %156 : vector<8x128xf32>
    %166 = arith.addf %162, %165 : vector<8x128xf32>
    %c11_80 = arith.constant 11 : index
    %c0_81 = arith.constant 0 : index
    %167 = vector.load %arg1[%c11_80, %c0_81] : memref<24x128xf32, #tpu.memory_space<vmem>>, vector<1x128xf32>
    %168 = vector.broadcast %167 : vector<1x128xf32> to vector<8x128xf32>
    %169 = arith.mulf %168, %159 : vector<8x128xf32>
    %170 = arith.addf %166, %169 : vector<8x128xf32>
    %c12_82 = arith.constant 12 : index
    %c0_83 = arith.constant 0 : index
    %171 = vector.load %arg1[%c12_82, %c0_83] : memref<24x128xf32, #tpu.memory_space<vmem>>, vector<1x128xf32>
    %172 = vector.broadcast %171 : vector<1x128xf32> to vector<8x128xf32>
    %173 = arith.mulf %172, %153 : vector<8x128xf32>
    %c13_84 = arith.constant 13 : index
    %c0_85 = arith.constant 0 : index
    %174 = vector.load %arg1[%c13_84, %c0_85] : memref<24x128xf32, #tpu.memory_space<vmem>>, vector<1x128xf32>
    %175 = vector.broadcast %174 : vector<1x128xf32> to vector<8x128xf32>
    %176 = arith.mulf %175, %156 : vector<8x128xf32>
    %177 = arith.addf %173, %176 : vector<8x128xf32>
    %c14_86 = arith.constant 14 : index
    %c0_87 = arith.constant 0 : index
    %178 = vector.load %arg1[%c14_86, %c0_87] : memref<24x128xf32, #tpu.memory_space<vmem>>, vector<1x128xf32>
    %179 = vector.broadcast %178 : vector<1x128xf32> to vector<8x128xf32>
    %180 = arith.mulf %179, %159 : vector<8x128xf32>
    %181 = arith.addf %177, %180 : vector<8x128xf32>
    %c15_88 = arith.constant 15 : index
    %c0_89 = arith.constant 0 : index
    %182 = vector.load %arg1[%c15_88, %c0_89] : memref<24x128xf32, #tpu.memory_space<vmem>>, vector<1x128xf32>
    %183 = vector.broadcast %182 : vector<1x128xf32> to vector<8x128xf32>
    %184 = arith.mulf %183, %153 : vector<8x128xf32>
    %c16_90 = arith.constant 16 : index
    %c0_91 = arith.constant 0 : index
    %185 = vector.load %arg1[%c16_90, %c0_91] : memref<24x128xf32, #tpu.memory_space<vmem>>, vector<1x128xf32>
    %186 = vector.broadcast %185 : vector<1x128xf32> to vector<8x128xf32>
    %187 = arith.mulf %186, %156 : vector<8x128xf32>
    %188 = arith.addf %184, %187 : vector<8x128xf32>
    %c17_92 = arith.constant 17 : index
    %c0_93 = arith.constant 0 : index
    %189 = vector.load %arg1[%c17_92, %c0_93] : memref<24x128xf32, #tpu.memory_space<vmem>>, vector<1x128xf32>
    %190 = vector.broadcast %189 : vector<1x128xf32> to vector<8x128xf32>
    %191 = arith.mulf %190, %159 : vector<8x128xf32>
    %192 = arith.addf %188, %191 : vector<8x128xf32>
    %193 = tpu.reciprocal %192 : vector<8x128xf32> -> vector<8x128xf32>
    %194 = arith.mulf %170, %193 : vector<8x128xf32>
    %cst_94 = arith.constant 0.00892857183 : f32
    %195 = vector.broadcast %cst_94 : f32 to vector<8x128xf32>
    %196 = arith.mulf %194, %195 : vector<8x128xf32>
    %cst_95 = arith.constant 1.000000e+00 : f32
    %197 = vector.broadcast %cst_95 : f32 to vector<8x128xf32>
    %198 = arith.subf %196, %197 : vector<8x128xf32>
    %199 = arith.mulf %181, %193 : vector<8x128xf32>
    %cst_96 = arith.constant 0.00892857183 : f32
    %200 = vector.broadcast %cst_96 : f32 to vector<8x128xf32>
    %201 = arith.mulf %199, %200 : vector<8x128xf32>
    %cst_97 = arith.constant 1.000000e+00 : f32
    %202 = vector.broadcast %cst_97 : f32 to vector<8x128xf32>
    %203 = arith.subf %201, %202 : vector<8x128xf32>
    %c8_98 = arith.constant 8 : index
    %c0_99 = arith.constant 0 : index
    %204 = vector.load %arg3[%c8_98, %c0_99] : memref<256x128xf32, #tpu.memory_space<vmem>>, vector<8x128xf32>
    tpu.vector_store %arg3[%c8_98, %c0_99], %122 {strides = array<i32>} : memref<256x128xf32, #tpu.memory_space<vmem>>, vector<8x128xf32>,
    %c40_100 = arith.constant 40 : index
    %c0_101 = arith.constant 0 : index
    %205 = vector.load %arg3[%c40_100, %c0_101] : memref<256x128xf32, #tpu.memory_space<vmem>>, vector<8x128xf32>
    tpu.vector_store %arg3[%c40_100, %c0_101], %136 {strides = array<i32>} : memref<256x128xf32, #tpu.memory_space<vmem>>, vector<8x128xf32>,
    %c72_102 = arith.constant 72 : index
    %c0_103 = arith.constant 0 : index
    %206 = vector.load %arg3[%c72_102, %c0_103] : memref<256x128xf32, #tpu.memory_space<vmem>>, vector<8x128xf32>
    tpu.vector_store %arg3[%c72_102, %c0_103], %150 {strides = array<i32>} : memref<256x128xf32, #tpu.memory_space<vmem>>, vector<8x128xf32>,
    %c104 = arith.constant 104 : index
    %c0_104 = arith.constant 0 : index
    %207 = vector.load %arg3[%c104, %c0_104] : memref<256x128xf32, #tpu.memory_space<vmem>>, vector<8x128xf32>
    tpu.vector_store %arg3[%c104, %c0_104], %153 {strides = array<i32>} : memref<256x128xf32, #tpu.memory_space<vmem>>, vector<8x128xf32>,
    %c136 = arith.constant 136 : index
    %c0_105 = arith.constant 0 : index
    %208 = vector.load %arg3[%c136, %c0_105] : memref<256x128xf32, #tpu.memory_space<vmem>>, vector<8x128xf32>
    tpu.vector_store %arg3[%c136, %c0_105], %156 {strides = array<i32>} : memref<256x128xf32, #tpu.memory_space<vmem>>, vector<8x128xf32>,
    %c168 = arith.constant 168 : index
    %c0_106 = arith.constant 0 : index
    %209 = vector.load %arg3[%c168, %c0_106] : memref<256x128xf32, #tpu.memory_space<vmem>>, vector<8x128xf32>
    tpu.vector_store %arg3[%c168, %c0_106], %159 {strides = array<i32>} : memref<256x128xf32, #tpu.memory_space<vmem>>, vector<8x128xf32>,
    %c200 = arith.constant 200 : index
    %c0_107 = arith.constant 0 : index
    %210 = vector.load %arg3[%c200, %c0_107] : memref<256x128xf32, #tpu.memory_space<vmem>>, vector<8x128xf32>
    tpu.vector_store %arg3[%c200, %c0_107], %198 {strides = array<i32>} : memref<256x128xf32, #tpu.memory_space<vmem>>, vector<8x128xf32>,
    %c232 = arith.constant 232 : index
    %c0_108 = arith.constant 0 : index
    %211 = vector.load %arg3[%c232, %c0_108] : memref<256x128xf32, #tpu.memory_space<vmem>>, vector<8x128xf32>
    tpu.vector_store %arg3[%c232, %c0_108], %203 {strides = array<i32>} : memref<256x128xf32, #tpu.memory_space<vmem>>, vector<8x128xf32>,
    %c16_109 = arith.constant 16 : index
    %c0_110 = arith.constant 0 : index
    %212 = vector.load %arg2[%c16_109, %c0_110] : memref<96x128xf32, #tpu.memory_space<vmem>>, vector<8x128xf32>
    %c48 = arith.constant 48 : index
    %c0_111 = arith.constant 0 : index
    %213 = vector.load %arg2[%c48, %c0_111] : memref<96x128xf32, #tpu.memory_space<vmem>>, vector<8x128xf32>
    %c80 = arith.constant 80 : index
    %c0_112 = arith.constant 0 : index
    %214 = vector.load %arg2[%c80, %c0_112] : memref<96x128xf32, #tpu.memory_space<vmem>>, vector<8x128xf32>
    %c0_113 = arith.constant 0 : index
    %c0_114 = arith.constant 0 : index
    %215 = vector.load %arg1[%c0_113, %c0_114] : memref<24x128xf32, #tpu.memory_space<vmem>>, vector<1x128xf32>
    %216 = vector.broadcast %215 : vector<1x128xf32> to vector<8x128xf32>
    %217 = arith.mulf %216, %212 : vector<8x128xf32>
    %c1_115 = arith.constant 1 : index
    %c0_116 = arith.constant 0 : index
    %218 = vector.load %arg1[%c1_115, %c0_116] : memref<24x128xf32, #tpu.memory_space<vmem>>, vector<1x128xf32>
    %219 = vector.broadcast %218 : vector<1x128xf32> to vector<8x128xf32>
    %220 = arith.mulf %219, %213 : vector<8x128xf32>
    %221 = arith.addf %217, %220 : vector<8x128xf32>
    %c2_117 = arith.constant 2 : index
    %c0_118 = arith.constant 0 : index
    %222 = vector.load %arg1[%c2_117, %c0_118] : memref<24x128xf32, #tpu.memory_space<vmem>>, vector<1x128xf32>
    %223 = vector.broadcast %222 : vector<1x128xf32> to vector<8x128xf32>
    %224 = arith.mulf %223, %214 : vector<8x128xf32>
    %225 = arith.addf %221, %224 : vector<8x128xf32>
    %c18_119 = arith.constant 18 : index
    %c0_120 = arith.constant 0 : index
    %226 = vector.load %arg1[%c18_119, %c0_120] : memref<24x128xf32, #tpu.memory_space<vmem>>, vector<1x128xf32>
    %227 = vector.broadcast %226 : vector<1x128xf32> to vector<8x128xf32>
    %228 = arith.addf %225, %227 : vector<8x128xf32>
    %c3_121 = arith.constant 3 : index
    %c0_122 = arith.constant 0 : index
    %229 = vector.load %arg1[%c3_121, %c0_122] : memref<24x128xf32, #tpu.memory_space<vmem>>, vector<1x128xf32>
    %230 = vector.broadcast %229 : vector<1x128xf32> to vector<8x128xf32>
    %231 = arith.mulf %230, %212 : vector<8x128xf32>
    %c4_123 = arith.constant 4 : index
    %c0_124 = arith.constant 0 : index
    %232 = vector.load %arg1[%c4_123, %c0_124] : memref<24x128xf32, #tpu.memory_space<vmem>>, vector<1x128xf32>
    %233 = vector.broadcast %232 : vector<1x128xf32> to vector<8x128xf32>
    %234 = arith.mulf %233, %213 : vector<8x128xf32>
    %235 = arith.addf %231, %234 : vector<8x128xf32>
    %c5_125 = arith.constant 5 : index
    %c0_126 = arith.constant 0 : index
    %236 = vector.load %arg1[%c5_125, %c0_126] : memref<24x128xf32, #tpu.memory_space<vmem>>, vector<1x128xf32>
    %237 = vector.broadcast %236 : vector<1x128xf32> to vector<8x128xf32>
    %238 = arith.mulf %237, %214 : vector<8x128xf32>
    %239 = arith.addf %235, %238 : vector<8x128xf32>
    %c19_127 = arith.constant 19 : index
    %c0_128 = arith.constant 0 : index
    %240 = vector.load %arg1[%c19_127, %c0_128] : memref<24x128xf32, #tpu.memory_space<vmem>>, vector<1x128xf32>
    %241 = vector.broadcast %240 : vector<1x128xf32> to vector<8x128xf32>
    %242 = arith.addf %239, %241 : vector<8x128xf32>
    %c6_129 = arith.constant 6 : index
    %c0_130 = arith.constant 0 : index
    %243 = vector.load %arg1[%c6_129, %c0_130] : memref<24x128xf32, #tpu.memory_space<vmem>>, vector<1x128xf32>
    %244 = vector.broadcast %243 : vector<1x128xf32> to vector<8x128xf32>
    %245 = arith.mulf %244, %212 : vector<8x128xf32>
    %c7_131 = arith.constant 7 : index
    %c0_132 = arith.constant 0 : index
    %246 = vector.load %arg1[%c7_131, %c0_132] : memref<24x128xf32, #tpu.memory_space<vmem>>, vector<1x128xf32>
    %247 = vector.broadcast %246 : vector<1x128xf32> to vector<8x128xf32>
    %248 = arith.mulf %247, %213 : vector<8x128xf32>
    %249 = arith.addf %245, %248 : vector<8x128xf32>
    %c8_133 = arith.constant 8 : index
    %c0_134 = arith.constant 0 : index
    %250 = vector.load %arg1[%c8_133, %c0_134] : memref<24x128xf32, #tpu.memory_space<vmem>>, vector<1x128xf32>
    %251 = vector.broadcast %250 : vector<1x128xf32> to vector<8x128xf32>
    %252 = arith.mulf %251, %214 : vector<8x128xf32>
    %253 = arith.addf %249, %252 : vector<8x128xf32>
    %c20_135 = arith.constant 20 : index
    %c0_136 = arith.constant 0 : index
    %254 = vector.load %arg1[%c20_135, %c0_136] : memref<24x128xf32, #tpu.memory_space<vmem>>, vector<1x128xf32>
    %255 = vector.broadcast %254 : vector<1x128xf32> to vector<8x128xf32>
    %256 = arith.addf %253, %255 : vector<8x128xf32>
    %c21_137 = arith.constant 21 : index
    %c0_138 = arith.constant 0 : index
    %257 = vector.load %arg1[%c21_137, %c0_138] : memref<24x128xf32, #tpu.memory_space<vmem>>, vector<1x128xf32>
    %258 = vector.broadcast %257 : vector<1x128xf32> to vector<8x128xf32>
    %259 = arith.addf %228, %258 : vector<8x128xf32>
    %c22_139 = arith.constant 22 : index
    %c0_140 = arith.constant 0 : index
    %260 = vector.load %arg1[%c22_139, %c0_140] : memref<24x128xf32, #tpu.memory_space<vmem>>, vector<1x128xf32>
    %261 = vector.broadcast %260 : vector<1x128xf32> to vector<8x128xf32>
    %262 = arith.addf %242, %261 : vector<8x128xf32>
    %c23_141 = arith.constant 23 : index
    %c0_142 = arith.constant 0 : index
    %263 = vector.load %arg1[%c23_141, %c0_142] : memref<24x128xf32, #tpu.memory_space<vmem>>, vector<1x128xf32>
    %264 = vector.broadcast %263 : vector<1x128xf32> to vector<8x128xf32>
    %265 = arith.addf %256, %264 : vector<8x128xf32>
    %c9_143 = arith.constant 9 : index
    %c0_144 = arith.constant 0 : index
    %266 = vector.load %arg1[%c9_143, %c0_144] : memref<24x128xf32, #tpu.memory_space<vmem>>, vector<1x128xf32>
    %267 = vector.broadcast %266 : vector<1x128xf32> to vector<8x128xf32>
    %268 = arith.mulf %267, %259 : vector<8x128xf32>
    %c10_145 = arith.constant 10 : index
    %c0_146 = arith.constant 0 : index
    %269 = vector.load %arg1[%c10_145, %c0_146] : memref<24x128xf32, #tpu.memory_space<vmem>>, vector<1x128xf32>
    %270 = vector.broadcast %269 : vector<1x128xf32> to vector<8x128xf32>
    %271 = arith.mulf %270, %262 : vector<8x128xf32>
    %272 = arith.addf %268, %271 : vector<8x128xf32>
    %c11_147 = arith.constant 11 : index
    %c0_148 = arith.constant 0 : index
    %273 = vector.load %arg1[%c11_147, %c0_148] : memref<24x128xf32, #tpu.memory_space<vmem>>, vector<1x128xf32>
    %274 = vector.broadcast %273 : vector<1x128xf32> to vector<8x128xf32>
    %275 = arith.mulf %274, %265 : vector<8x128xf32>
    %276 = arith.addf %272, %275 : vector<8x128xf32>
    %c12_149 = arith.constant 12 : index
    %c0_150 = arith.constant 0 : index
    %277 = vector.load %arg1[%c12_149, %c0_150] : memref<24x128xf32, #tpu.memory_space<vmem>>, vector<1x128xf32>
    %278 = vector.broadcast %277 : vector<1x128xf32> to vector<8x128xf32>
    %279 = arith.mulf %278, %259 : vector<8x128xf32>
    %c13_151 = arith.constant 13 : index
    %c0_152 = arith.constant 0 : index
    %280 = vector.load %arg1[%c13_151, %c0_152] : memref<24x128xf32, #tpu.memory_space<vmem>>, vector<1x128xf32>
    %281 = vector.broadcast %280 : vector<1x128xf32> to vector<8x128xf32>
    %282 = arith.mulf %281, %262 : vector<8x128xf32>
    %283 = arith.addf %279, %282 : vector<8x128xf32>
    %c14_153 = arith.constant 14 : index
    %c0_154 = arith.constant 0 : index
    %284 = vector.load %arg1[%c14_153, %c0_154] : memref<24x128xf32, #tpu.memory_space<vmem>>, vector<1x128xf32>
    %285 = vector.broadcast %284 : vector<1x128xf32> to vector<8x128xf32>
    %286 = arith.mulf %285, %265 : vector<8x128xf32>
    %287 = arith.addf %283, %286 : vector<8x128xf32>
    %c15_155 = arith.constant 15 : index
    %c0_156 = arith.constant 0 : index
    %288 = vector.load %arg1[%c15_155, %c0_156] : memref<24x128xf32, #tpu.memory_space<vmem>>, vector<1x128xf32>
    %289 = vector.broadcast %288 : vector<1x128xf32> to vector<8x128xf32>
    %290 = arith.mulf %289, %259 : vector<8x128xf32>
    %c16_157 = arith.constant 16 : index
    %c0_158 = arith.constant 0 : index
    %291 = vector.load %arg1[%c16_157, %c0_158] : memref<24x128xf32, #tpu.memory_space<vmem>>, vector<1x128xf32>
    %292 = vector.broadcast %291 : vector<1x128xf32> to vector<8x128xf32>
    %293 = arith.mulf %292, %262 : vector<8x128xf32>
    %294 = arith.addf %290, %293 : vector<8x128xf32>
    %c17_159 = arith.constant 17 : index
    %c0_160 = arith.constant 0 : index
    %295 = vector.load %arg1[%c17_159, %c0_160] : memref<24x128xf32, #tpu.memory_space<vmem>>, vector<1x128xf32>
    %296 = vector.broadcast %295 : vector<1x128xf32> to vector<8x128xf32>
    %297 = arith.mulf %296, %265 : vector<8x128xf32>
    %298 = arith.addf %294, %297 : vector<8x128xf32>
    %299 = tpu.reciprocal %298 : vector<8x128xf32> -> vector<8x128xf32>
    %300 = arith.mulf %276, %299 : vector<8x128xf32>
    %cst_161 = arith.constant 0.00892857183 : f32
    %301 = vector.broadcast %cst_161 : f32 to vector<8x128xf32>
    %302 = arith.mulf %300, %301 : vector<8x128xf32>
    %cst_162 = arith.constant 1.000000e+00 : f32
    %303 = vector.broadcast %cst_162 : f32 to vector<8x128xf32>
    %304 = arith.subf %302, %303 : vector<8x128xf32>
    %305 = arith.mulf %287, %299 : vector<8x128xf32>
    %cst_163 = arith.constant 0.00892857183 : f32
    %306 = vector.broadcast %cst_163 : f32 to vector<8x128xf32>
    %307 = arith.mulf %305, %306 : vector<8x128xf32>
    %cst_164 = arith.constant 1.000000e+00 : f32
    %308 = vector.broadcast %cst_164 : f32 to vector<8x128xf32>
    %309 = arith.subf %307, %308 : vector<8x128xf32>
    %c16_165 = arith.constant 16 : index
    %c0_166 = arith.constant 0 : index
    %310 = vector.load %arg3[%c16_165, %c0_166] : memref<256x128xf32, #tpu.memory_space<vmem>>, vector<8x128xf32>
    tpu.vector_store %arg3[%c16_165, %c0_166], %228 {strides = array<i32>} : memref<256x128xf32, #tpu.memory_space<vmem>>, vector<8x128xf32>,
    %c48_167 = arith.constant 48 : index
    %c0_168 = arith.constant 0 : index
    %311 = vector.load %arg3[%c48_167, %c0_168] : memref<256x128xf32, #tpu.memory_space<vmem>>, vector<8x128xf32>
    tpu.vector_store %arg3[%c48_167, %c0_168], %242 {strides = array<i32>} : memref<256x128xf32, #tpu.memory_space<vmem>>, vector<8x128xf32>,
    %c80_169 = arith.constant 80 : index
    %c0_170 = arith.constant 0 : index
    %312 = vector.load %arg3[%c80_169, %c0_170] : memref<256x128xf32, #tpu.memory_space<vmem>>, vector<8x128xf32>
    tpu.vector_store %arg3[%c80_169, %c0_170], %256 {strides = array<i32>} : memref<256x128xf32, #tpu.memory_space<vmem>>, vector<8x128xf32>,
    %c112 = arith.constant 112 : index
    %c0_171 = arith.constant 0 : index
    %313 = vector.load %arg3[%c112, %c0_171] : memref<256x128xf32, #tpu.memory_space<vmem>>, vector<8x128xf32>
    tpu.vector_store %arg3[%c112, %c0_171], %259 {strides = array<i32>} : memref<256x128xf32, #tpu.memory_space<vmem>>, vector<8x128xf32>,
    %c144 = arith.constant 144 : index
    %c0_172 = arith.constant 0 : index
    %314 = vector.load %arg3[%c144, %c0_172] : memref<256x128xf32, #tpu.memory_space<vmem>>, vector<8x128xf32>
    tpu.vector_store %arg3[%c144, %c0_172], %262 {strides = array<i32>} : memref<256x128xf32, #tpu.memory_space<vmem>>, vector<8x128xf32>,
    %c176 = arith.constant 176 : index
    %c0_173 = arith.constant 0 : index
    %315 = vector.load %arg3[%c176, %c0_173] : memref<256x128xf32, #tpu.memory_space<vmem>>, vector<8x128xf32>
    tpu.vector_store %arg3[%c176, %c0_173], %265 {strides = array<i32>} : memref<256x128xf32, #tpu.memory_space<vmem>>, vector<8x128xf32>,
    %c208 = arith.constant 208 : index
    %c0_174 = arith.constant 0 : index
    %316 = vector.load %arg3[%c208, %c0_174] : memref<256x128xf32, #tpu.memory_space<vmem>>, vector<8x128xf32>
    tpu.vector_store %arg3[%c208, %c0_174], %304 {strides = array<i32>} : memref<256x128xf32, #tpu.memory_space<vmem>>, vector<8x128xf32>,
    %c240 = arith.constant 240 : index
    %c0_175 = arith.constant 0 : index
    %317 = vector.load %arg3[%c240, %c0_175] : memref<256x128xf32, #tpu.memory_space<vmem>>, vector<8x128xf32>
    tpu.vector_store %arg3[%c240, %c0_175], %309 {strides = array<i32>} : memref<256x128xf32, #tpu.memory_space<vmem>>, vector<8x128xf32>,
    %c24 = arith.constant 24 : index
    %c0_176 = arith.constant 0 : index
    %318 = vector.load %arg2[%c24, %c0_176] : memref<96x128xf32, #tpu.memory_space<vmem>>, vector<8x128xf32>
    %c56 = arith.constant 56 : index
    %c0_177 = arith.constant 0 : index
    %319 = vector.load %arg2[%c56, %c0_177] : memref<96x128xf32, #tpu.memory_space<vmem>>, vector<8x128xf32>
    %c88 = arith.constant 88 : index
    %c0_178 = arith.constant 0 : index
    %320 = vector.load %arg2[%c88, %c0_178] : memref<96x128xf32, #tpu.memory_space<vmem>>, vector<8x128xf32>
    %c0_179 = arith.constant 0 : index
    %c0_180 = arith.constant 0 : index
    %321 = vector.load %arg1[%c0_179, %c0_180] : memref<24x128xf32, #tpu.memory_space<vmem>>, vector<1x128xf32>
    %322 = vector.broadcast %321 : vector<1x128xf32> to vector<8x128xf32>
    %323 = arith.mulf %322, %318 : vector<8x128xf32>
    %c1_181 = arith.constant 1 : index
    %c0_182 = arith.constant 0 : index
    %324 = vector.load %arg1[%c1_181, %c0_182] : memref<24x128xf32, #tpu.memory_space<vmem>>, vector<1x128xf32>
    %325 = vector.broadcast %324 : vector<1x128xf32> to vector<8x128xf32>
    %326 = arith.mulf %325, %319 : vector<8x128xf32>
    %327 = arith.addf %323, %326 : vector<8x128xf32>
    %c2_183 = arith.constant 2 : index
    %c0_184 = arith.constant 0 : index
    %328 = vector.load %arg1[%c2_183, %c0_184] : memref<24x128xf32, #tpu.memory_space<vmem>>, vector<1x128xf32>
    %329 = vector.broadcast %328 : vector<1x128xf32> to vector<8x128xf32>
    %330 = arith.mulf %329, %320 : vector<8x128xf32>
    %331 = arith.addf %327, %330 : vector<8x128xf32>
    %c18_185 = arith.constant 18 : index
    %c0_186 = arith.constant 0 : index
    %332 = vector.load %arg1[%c18_185, %c0_186] : memref<24x128xf32, #tpu.memory_space<vmem>>, vector<1x128xf32>
    %333 = vector.broadcast %332 : vector<1x128xf32> to vector<8x128xf32>
    %334 = arith.addf %331, %333 : vector<8x128xf32>
    %c3_187 = arith.constant 3 : index
    %c0_188 = arith.constant 0 : index
    %335 = vector.load %arg1[%c3_187, %c0_188] : memref<24x128xf32, #tpu.memory_space<vmem>>, vector<1x128xf32>
    %336 = vector.broadcast %335 : vector<1x128xf32> to vector<8x128xf32>
    %337 = arith.mulf %336, %318 : vector<8x128xf32>
    %c4_189 = arith.constant 4 : index
    %c0_190 = arith.constant 0 : index
    %338 = vector.load %arg1[%c4_189, %c0_190] : memref<24x128xf32, #tpu.memory_space<vmem>>, vector<1x128xf32>
    %339 = vector.broadcast %338 : vector<1x128xf32> to vector<8x128xf32>
    %340 = arith.mulf %339, %319 : vector<8x128xf32>
    %341 = arith.addf %337, %340 : vector<8x128xf32>
    %c5_191 = arith.constant 5 : index
    %c0_192 = arith.constant 0 : index
    %342 = vector.load %arg1[%c5_191, %c0_192] : memref<24x128xf32, #tpu.memory_space<vmem>>, vector<1x128xf32>
    %343 = vector.broadcast %342 : vector<1x128xf32> to vector<8x128xf32>
    %344 = arith.mulf %343, %320 : vector<8x128xf32>
    %345 = arith.addf %341, %344 : vector<8x128xf32>
    %c19_193 = arith.constant 19 : index
    %c0_194 = arith.constant 0 : index
    %346 = vector.load %arg1[%c19_193, %c0_194] : memref<24x128xf32, #tpu.memory_space<vmem>>, vector<1x128xf32>
    %347 = vector.broadcast %346 : vector<1x128xf32> to vector<8x128xf32>
    %348 = arith.addf %345, %347 : vector<8x128xf32>
    %c6_195 = arith.constant 6 : index
    %c0_196 = arith.constant 0 : index
    %349 = vector.load %arg1[%c6_195, %c0_196] : memref<24x128xf32, #tpu.memory_space<vmem>>, vector<1x128xf32>
    %350 = vector.broadcast %349 : vector<1x128xf32> to vector<8x128xf32>
    %351 = arith.mulf %350, %318 : vector<8x128xf32>
    %c7_197 = arith.constant 7 : index
    %c0_198 = arith.constant 0 : index
    %352 = vector.load %arg1[%c7_197, %c0_198] : memref<24x128xf32, #tpu.memory_space<vmem>>, vector<1x128xf32>
    %353 = vector.broadcast %352 : vector<1x128xf32> to vector<8x128xf32>
    %354 = arith.mulf %353, %319 : vector<8x128xf32>
    %355 = arith.addf %351, %354 : vector<8x128xf32>
    %c8_199 = arith.constant 8 : index
    %c0_200 = arith.constant 0 : index
    %356 = vector.load %arg1[%c8_199, %c0_200] : memref<24x128xf32, #tpu.memory_space<vmem>>, vector<1x128xf32>
    %357 = vector.broadcast %356 : vector<1x128xf32> to vector<8x128xf32>
    %358 = arith.mulf %357, %320 : vector<8x128xf32>
    %359 = arith.addf %355, %358 : vector<8x128xf32>
    %c20_201 = arith.constant 20 : index
    %c0_202 = arith.constant 0 : index
    %360 = vector.load %arg1[%c20_201, %c0_202] : memref<24x128xf32, #tpu.memory_space<vmem>>, vector<1x128xf32>
    %361 = vector.broadcast %360 : vector<1x128xf32> to vector<8x128xf32>
    %362 = arith.addf %359, %361 : vector<8x128xf32>
    %c21_203 = arith.constant 21 : index
    %c0_204 = arith.constant 0 : index
    %363 = vector.load %arg1[%c21_203, %c0_204] : memref<24x128xf32, #tpu.memory_space<vmem>>, vector<1x128xf32>
    %364 = vector.broadcast %363 : vector<1x128xf32> to vector<8x128xf32>
    %365 = arith.addf %334, %364 : vector<8x128xf32>
    %c22_205 = arith.constant 22 : index
    %c0_206 = arith.constant 0 : index
    %366 = vector.load %arg1[%c22_205, %c0_206] : memref<24x128xf32, #tpu.memory_space<vmem>>, vector<1x128xf32>
    %367 = vector.broadcast %366 : vector<1x128xf32> to vector<8x128xf32>
    %368 = arith.addf %348, %367 : vector<8x128xf32>
    %c23_207 = arith.constant 23 : index
    %c0_208 = arith.constant 0 : index
    %369 = vector.load %arg1[%c23_207, %c0_208] : memref<24x128xf32, #tpu.memory_space<vmem>>, vector<1x128xf32>
    %370 = vector.broadcast %369 : vector<1x128xf32> to vector<8x128xf32>
    %371 = arith.addf %362, %370 : vector<8x128xf32>
    %c9_209 = arith.constant 9 : index
    %c0_210 = arith.constant 0 : index
    %372 = vector.load %arg1[%c9_209, %c0_210] : memref<24x128xf32, #tpu.memory_space<vmem>>, vector<1x128xf32>
    %373 = vector.broadcast %372 : vector<1x128xf32> to vector<8x128xf32>
    %374 = arith.mulf %373, %365 : vector<8x128xf32>
    %c10_211 = arith.constant 10 : index
    %c0_212 = arith.constant 0 : index
    %375 = vector.load %arg1[%c10_211, %c0_212] : memref<24x128xf32, #tpu.memory_space<vmem>>, vector<1x128xf32>
    %376 = vector.broadcast %375 : vector<1x128xf32> to vector<8x128xf32>
    %377 = arith.mulf %376, %368 : vector<8x128xf32>
    %378 = arith.addf %374, %377 : vector<8x128xf32>
    %c11_213 = arith.constant 11 : index
    %c0_214 = arith.constant 0 : index
    %379 = vector.load %arg1[%c11_213, %c0_214] : memref<24x128xf32, #tpu.memory_space<vmem>>, vector<1x128xf32>
    %380 = vector.broadcast %379 : vector<1x128xf32> to vector<8x128xf32>
    %381 = arith.mulf %380, %371 : vector<8x128xf32>
    %382 = arith.addf %378, %381 : vector<8x128xf32>
    %c12_215 = arith.constant 12 : index
    %c0_216 = arith.constant 0 : index
    %383 = vector.load %arg1[%c12_215, %c0_216] : memref<24x128xf32, #tpu.memory_space<vmem>>, vector<1x128xf32>
    %384 = vector.broadcast %383 : vector<1x128xf32> to vector<8x128xf32>
    %385 = arith.mulf %384, %365 : vector<8x128xf32>
    %c13_217 = arith.constant 13 : index
    %c0_218 = arith.constant 0 : index
    %386 = vector.load %arg1[%c13_217, %c0_218] : memref<24x128xf32, #tpu.memory_space<vmem>>, vector<1x128xf32>
    %387 = vector.broadcast %386 : vector<1x128xf32> to vector<8x128xf32>
    %388 = arith.mulf %387, %368 : vector<8x128xf32>
    %389 = arith.addf %385, %388 : vector<8x128xf32>
    %c14_219 = arith.constant 14 : index
    %c0_220 = arith.constant 0 : index
    %390 = vector.load %arg1[%c14_219, %c0_220] : memref<24x128xf32, #tpu.memory_space<vmem>>, vector<1x128xf32>
    %391 = vector.broadcast %390 : vector<1x128xf32> to vector<8x128xf32>
    %392 = arith.mulf %391, %371 : vector<8x128xf32>
    %393 = arith.addf %389, %392 : vector<8x128xf32>
    %c15_221 = arith.constant 15 : index
    %c0_222 = arith.constant 0 : index
    %394 = vector.load %arg1[%c15_221, %c0_222] : memref<24x128xf32, #tpu.memory_space<vmem>>, vector<1x128xf32>
    %395 = vector.broadcast %394 : vector<1x128xf32> to vector<8x128xf32>
    %396 = arith.mulf %395, %365 : vector<8x128xf32>
    %c16_223 = arith.constant 16 : index
    %c0_224 = arith.constant 0 : index
    %397 = vector.load %arg1[%c16_223, %c0_224] : memref<24x128xf32, #tpu.memory_space<vmem>>, vector<1x128xf32>
    %398 = vector.broadcast %397 : vector<1x128xf32> to vector<8x128xf32>
    %399 = arith.mulf %398, %368 : vector<8x128xf32>
    %400 = arith.addf %396, %399 : vector<8x128xf32>
    %c17_225 = arith.constant 17 : index
    %c0_226 = arith.constant 0 : index
    %401 = vector.load %arg1[%c17_225, %c0_226] : memref<24x128xf32, #tpu.memory_space<vmem>>, vector<1x128xf32>
    %402 = vector.broadcast %401 : vector<1x128xf32> to vector<8x128xf32>
    %403 = arith.mulf %402, %371 : vector<8x128xf32>
    %404 = arith.addf %400, %403 : vector<8x128xf32>
    %405 = tpu.reciprocal %404 : vector<8x128xf32> -> vector<8x128xf32>
    %406 = arith.mulf %382, %405 : vector<8x128xf32>
    %cst_227 = arith.constant 0.00892857183 : f32
    %407 = vector.broadcast %cst_227 : f32 to vector<8x128xf32>
    %408 = arith.mulf %406, %407 : vector<8x128xf32>
    %cst_228 = arith.constant 1.000000e+00 : f32
    %409 = vector.broadcast %cst_228 : f32 to vector<8x128xf32>
    %410 = arith.subf %408, %409 : vector<8x128xf32>
    %411 = arith.mulf %393, %405 : vector<8x128xf32>
    %cst_229 = arith.constant 0.00892857183 : f32
    %412 = vector.broadcast %cst_229 : f32 to vector<8x128xf32>
    %413 = arith.mulf %411, %412 : vector<8x128xf32>
    %cst_230 = arith.constant 1.000000e+00 : f32
    %414 = vector.broadcast %cst_230 : f32 to vector<8x128xf32>
    %415 = arith.subf %413, %414 : vector<8x128xf32>
    %c24_231 = arith.constant 24 : index
    %c0_232 = arith.constant 0 : index
    %416 = vector.load %arg3[%c24_231, %c0_232] : memref<256x128xf32, #tpu.memory_space<vmem>>, vector<8x128xf32>
    tpu.vector_store %arg3[%c24_231, %c0_232], %334 {strides = array<i32>} : memref<256x128xf32, #tpu.memory_space<vmem>>, vector<8x128xf32>,
    %c56_233 = arith.constant 56 : index
    %c0_234 = arith.constant 0 : index
    %417 = vector.load %arg3[%c56_233, %c0_234] : memref<256x128xf32, #tpu.memory_space<vmem>>, vector<8x128xf32>
    tpu.vector_store %arg3[%c56_233, %c0_234], %348 {strides = array<i32>} : memref<256x128xf32, #tpu.memory_space<vmem>>, vector<8x128xf32>,
    %c88_235 = arith.constant 88 : index
    %c0_236 = arith.constant 0 : index
    %418 = vector.load %arg3[%c88_235, %c0_236] : memref<256x128xf32, #tpu.memory_space<vmem>>, vector<8x128xf32>
    tpu.vector_store %arg3[%c88_235, %c0_236], %362 {strides = array<i32>} : memref<256x128xf32, #tpu.memory_space<vmem>>, vector<8x128xf32>,
    %c120 = arith.constant 120 : index
    %c0_237 = arith.constant 0 : index
    %419 = vector.load %arg3[%c120, %c0_237] : memref<256x128xf32, #tpu.memory_space<vmem>>, vector<8x128xf32>
    tpu.vector_store %arg3[%c120, %c0_237], %365 {strides = array<i32>} : memref<256x128xf32, #tpu.memory_space<vmem>>, vector<8x128xf32>,
    %c152 = arith.constant 152 : index
    %c0_238 = arith.constant 0 : index
    %420 = vector.load %arg3[%c152, %c0_238] : memref<256x128xf32, #tpu.memory_space<vmem>>, vector<8x128xf32>
    tpu.vector_store %arg3[%c152, %c0_238], %368 {strides = array<i32>} : memref<256x128xf32, #tpu.memory_space<vmem>>, vector<8x128xf32>,
    %c184 = arith.constant 184 : index
    %c0_239 = arith.constant 0 : index
    %421 = vector.load %arg3[%c184, %c0_239] : memref<256x128xf32, #tpu.memory_space<vmem>>, vector<8x128xf32>
    tpu.vector_store %arg3[%c184, %c0_239], %371 {strides = array<i32>} : memref<256x128xf32, #tpu.memory_space<vmem>>, vector<8x128xf32>,
    %c216 = arith.constant 216 : index
    %c0_240 = arith.constant 0 : index
    %422 = vector.load %arg3[%c216, %c0_240] : memref<256x128xf32, #tpu.memory_space<vmem>>, vector<8x128xf32>
    tpu.vector_store %arg3[%c216, %c0_240], %410 {strides = array<i32>} : memref<256x128xf32, #tpu.memory_space<vmem>>, vector<8x128xf32>,
    %c248 = arith.constant 248 : index
    %c0_241 = arith.constant 0 : index
    %423 = vector.load %arg3[%c248, %c0_241] : memref<256x128xf32, #tpu.memory_space<vmem>>, vector<8x128xf32>
    tpu.vector_store %arg3[%c248, %c0_241], %415 {strides = array<i32>} : memref<256x128xf32, #tpu.memory_space<vmem>>, vector<8x128xf32>,
    return
  }
  func.func @transform_0(%arg0: i32) -> (i32, i32) {
    %c0_i32 = arith.constant 0 : i32
    %c0_i32_0 = arith.constant 0 : i32
    return %c0_i32, %arg0 : i32, i32
  }
  func.func @transform_1(%arg0: i32) -> (i32, i32) {
    %c0_i32 = arith.constant 0 : i32
    %c0_i32_0 = arith.constant 0 : i32
    return %c0_i32, %arg0 : i32, i32
  }
  func.func @transform_2(%arg0: i32) -> (i32, i32) {
    %c0_i32 = arith.constant 0 : i32
    %c0_i32_0 = arith.constant 0 : i32
    return %c0_i32, %arg0 : i32, i32
  }
}

</mosaic_0001>

<bundles_post_ra>
// kernel: tpu_custom_call.1
= control target key start
LH: loop header
LB: loop body
LE: loop exit
PB: predicated region body
PF: predicated region fallthrough
CT: control target
= control target key end

     0   :  { %7 = vsyncpa [#allocation3], 0  ;;  %s1162_s0 = inlined_call_operand.hbm [shape: f32[24,128], index: 0, kind: input, shape index: {}]   ;;  %s1163_s1 = inlined_call_operand.hbm [shape: f32[96,128], index: 1, kind: input, shape index: {}]   ;;  %s1164_s2 = inlined_call_operand.hbm [shape: f32[256,128], index: 2, kind: output, shape index: {}]  }
   0x1   :  { %8 = vsyncpa [#allocation6], 0 }
   0x2   :  { %9 = vsyncpa [#allocation4], 0  ;;  %s943_s9 = smov [#allocation2]   ;;  %s871_s13 = scalar_lea.hbm %s1162_s0, 384 }
   0x3   :  { %s15_s10 = sshll.u32 %s943_s9, 4  ;;  %p872_p0 = scmp.ne.s32.totalorder %s1162_s0, %s871_s13  ;;  %s16_s10 = int_to_ptr.vmem [resolvable:$true] %s15_s10 }
   0x4   :  { %p875_p1 = scmp.lt.u32.totalorder %s871_s13, %s1162_s0 }
   0x6   :  { %p877_p2 = pnand %p875_p1, %p872_p0 }
   0x8   :  { %880 = shalt.err (!%p877_p2)
}
   0x9   :  { %s881_s18 = scalar_lea.vmem %s16_s10, 384  ;;  %p886_p4 = scmp.lt.s32.totalorder %s16_s10, %s16_s10 }
   0xa   :  { %p882_p3 = scmp.ne.s32.totalorder %s16_s10, %s881_s18  ;;  %p887_p5 = scmp.lt.s32.totalorder %s881_s18, %s881_s18 }
   0xc   :  { %p888_p6 = por %p887_p5, %p886_p4 }
   0xe   :  { %p889_p7 = pnand %p888_p6, %p882_p3 }
  0x10   :  { %892 = shalt.err (!%p889_p7)
}
  0x11   :  { %s944_s19 = smov 128   ;;  %s945_s20 = smov 8  }
  0x12   :  { %21 = dma.hbm_to_vmem [thread:$0]  %s1162_s0, 384, %s16_s10, [#allocation3], %s944_s19, %s944_s19, %s945_s20  }
  0x13   :  { %s946_s23 = smov [#allocation5]   ;;  %s893_s27 = scalar_lea.hbm %s1163_s1, 1536 }
  0x14   :  { %s27_s24 = sshll.u32 %s946_s23, 4  ;;  %p894_p8 = scmp.ne.s32.totalorder %s1163_s1, %s893_s27  ;;  %s28_s24 = int_to_ptr.vmem [resolvable:$true] %s27_s24 }
  0x15   :  { %p897_p9 = scmp.lt.u32.totalorder %s893_s27, %s1163_s1 }
  0x17   :  { %p899_p10 = pnand %p897_p9, %p894_p8 }
  0x19   :  { %902 = shalt.err (!%p899_p10)
}
  0x1a   :  { %s903_s4 = scalar_lea.vmem %s28_s24, 1536  ;;  %p908_p12 = scmp.lt.s32.totalorder %s28_s24, %s28_s24 }
  0x1b   :  { %p904_p11 = scmp.ne.s32.totalorder %s28_s24, %s903_s4  ;;  %p909_p13 = scmp.lt.s32.totalorder %s903_s4, %s903_s4 }
  0x1d   :  { %p910_p0 = por %p909_p13, %p908_p12 }
  0x1f   :  { %p911_p1 = pnand %p910_p0, %p904_p11 }
  0x21   :  { %914 = shalt.err (!%p911_p1)
}
  0x22   :  { %33 = dma.hbm_to_vmem [thread:$0]  %s1163_s1, 1536, %s28_s24, [#allocation6], %s944_s19, %s944_s19, %s945_s20  }
  0x23   :  { %937 = dma.done.wait [#allocation3], 384  }
  0x24   :  { %938 = vsyncadd [#allocation3], 4294966912 }
  0x25   :  { %939 = dma.done.wait [#allocation6], 1536  }
  0x26   :  { %940 = vsyncadd [#allocation6], 4294965760  ;;  %v40_v0 = vld [vmem:[#allocation5] sm:$0xff]  ;;  %v993_v3 = vld [vmem:[#allocation2] ss:$0 sm:$0xff]  ;;  %s947_s1 = smov [#allocation7]  }
  0x27   :  { %v41_v1 = vld [vmem:[#allocation5 + $0x20] sm:$0xff]  ;;  %v995_v4 = vld [vmem:[#allocation2 + $0x1] ss:$0 sm:$0xff]  ;;  %v997_v5 = vld [vmem:[#allocation2 + $0x2] ss:$0 sm:$0xff]  ;;  %v48_v6 = vmul.f32 %v993_v3, %v40_v0  ;;  %s741_s6 = sshll.u32 %s947_s1, 4  ;;  %s742_s6 = int_to_ptr.vmem [resolvable:$true] %s741_s6 }
  0x28   :  { %v42_v2 = vld [vmem:[#allocation5 + $0x40] sm:$0xff]  ;;  %v54_v7 = vmul.f32 %v995_v4, %v41_v1  ;;  %v1002_v9 = vld [vmem:[#allocation2 + $0x3] ss:$0 sm:$0xff]  ;;  %v1004_v10 = vld [vmem:[#allocation2 + $0x4] ss:$0 sm:$0xff]  ;;  %s915_s7 = scalar_lea.vmem %s742_s6, 4096  ;;  %p920_p3 = scmp.lt.s32.totalorder %s742_s6, %s742_s6 }
  0x29   :  { %v61_v8 = vmul.f32 %v997_v5, %v42_v2  ;;  %v1006_v11 = vld [vmem:[#allocation2 + $0x5] ss:$0 sm:$0xff]  ;;  %v1008_v13 = vld [vmem:[#allocation2 + $0x12] ss:$0 sm:$0xff]  ;;  %v74_v14 = vmul.f32 %v1002_v9, %v40_v0  ;;  %v80_v15 = vmul.f32 %v1004_v10, %v41_v1  ;;  %v1013_v17 = vld [vmem:[#allocation2 + $0x6] ss:$0 sm:$0xff]  ;;  %p916_p2 = scmp.ne.s32.totalorder %s742_s6, %s915_s7  ;;  %p921_p4 = scmp.lt.s32.totalorder %s915_s7, %s915_s7 }
  0x2a   :  { %v55_v12 = vadd.f32 %v54_v7, %v48_v6  ;;  %v87_v16 = vmul.f32 %v1006_v11, %v42_v2  ;;  %v1015_v18 = vld [vmem:[#allocation2 + $0x7] ss:$0 sm:$0xff]  ;;  %v1017_v19 = vld [vmem:[#allocation2 + $0x8] ss:$0 sm:$0xff]  ;;  %v100_v22 = vmul.f32 %v1013_v17, %v40_v0  ;;  %v1021_v24 = vld [vmem:[#allocation2 + $0x15] ss:$0 sm:$0xff] }
  0x2b   :  { %v81_v21 = vadd.f32 %v80_v15, %v74_v14  ;;  %v106_v23 = vmul.f32 %v1015_v18, %v41_v1  ;;  %v1023_v25 = vld [vmem:[#allocation2 + $0x13] ss:$0 sm:$0xff]  ;;  %v113_v26 = vmul.f32 %v1017_v19, %v42_v2  ;;  %v1027_v28 = vld [vmem:[#allocation2 + $0xf] ss:$0 sm:$0xff]  ;;  %v1029_v30 = vld [vmem:[#allocation2 + $0x16] ss:$0 sm:$0xff]  ;;  %p922_p5 = por %p921_p4, %p920_p3 }
  0x2c   :  { %v62_v20 = vadd.f32 %v61_v8, %v55_v12  ;;  %v1031_v32 = vld [vmem:[#allocation2 + $0x14] ss:$0 sm:$0xff]  ;;  %v214_v33 = vld [vmem:[#allocation5 + $0x8] sm:$0xff]  ;;  %v1035_v38 = vld [vmem:[#allocation2 + $0x10] ss:$0 sm:$0xff] }
  0x2d   :  { %v88_v29 = vadd.f32 %v87_v16, %v81_v21  ;;  %v107_v31 = vadd.f32 %v106_v23, %v100_v22  ;;  %v215_v34 = vld [vmem:[#allocation5 + $0x28] sm:$0xff]  ;;  %v222_v40 = vmul.f32 %v993_v3, %v214_v33  ;;  %v1038_v41 = vld [vmem:[#allocation2 + $0x17] ss:$0 sm:$0xff]  ;;  %v1040_v42 = vld [vmem:[#allocation2 + $0x9] ss:$0 sm:$0xff]  ;;  %v248_v46 = vmul.f32 %v1002_v9, %v214_v33  ;;  %p923_p6 = pnand %p922_p5, %p916_p2 }
  0x2e   :  { %v68_v27 = vadd.f32 %v1008_v13, %v62_v20  ;;  %v216_v35 = vld [vmem:[#allocation5 + $0x48] sm:$0xff]  ;;  %v1042_v43 = vld [vmem:[#allocation2 + $0xa] ss:$0 sm:$0xff]  ;;  %v228_v44 = vmul.f32 %v995_v4, %v215_v34  ;;  %v254_v47 = vmul.f32 %v1004_v10, %v215_v34  ;;  %v1051_v51 = vld [vmem:[#allocation2 + $0x11] ss:$0 sm:$0xff]  ;;  %v274_v63 = vmul.f32 %v1013_v17, %v214_v33 }
  0x2f   :  { %v94_v37 = vadd.f32 %v1023_v25, %v88_v29  ;;  %v114_v39 = vadd.f32 %v113_v26, %v107_v31  ;;  %v235_v45 = vmul.f32 %v997_v5, %v216_v35  ;;  %v261_v54 = vmul.f32 %v1006_v11, %v216_v35  ;;  %v1058_v59 = vld [vmem:[#allocation2 + $0xc] ss:$0 sm:$0xff]  ;;  %v1060_v60 = vld [vmem:[#allocation2 + $0xd] ss:$0 sm:$0xff]  ;;  %v1065_v6 = vld [vmem:[#allocation2 + $0xb] ss:$0 sm:$0xff] }
  0x30   :  { %v126_v36 = vadd.f32 %v1021_v24, %v68_v27  ;;  %206 = vst [vmem:[#allocation7] sm:$0xff] %v68_v27  ;;  %v229_v52 = vadd.f32 %v228_v44, %v222_v40  ;;  %v255_v53 = vadd.f32 %v254_v47, %v248_v46  ;;  %v280_v0 = vmul.f32 %v1015_v18, %v215_v34  ;;  %v388_v7 = vld [vmem:[#allocation5 + $0x10] sm:$0xff] }
  0x31   :  { %v132_v49 = vadd.f32 %v1029_v30, %v94_v37  ;;  %207 = vst [vmem:[#allocation7 + $0x20] sm:$0xff] %v94_v37  ;;  %v120_v50 = vadd.f32 %v1031_v32, %v114_v39  ;;  %v389_v16 = vld [vmem:[#allocation5 + $0x30] sm:$0xff]  ;;  %v287_v27 = vmul.f32 %v1017_v19, %v216_v35  ;;  %v396_v34 = vmul.f32 %v993_v3, %v388_v7 }
  0x32   :  { %v184_v48 = vmul.f32 %v1027_v28, %v126_v36  ;;  %209 = vst [vmem:[#allocation7 + $0x60] sm:$0xff] %v126_v36  ;;  %v144_v57 = vmul.f32 %v1040_v42, %v126_v36  ;;  %v236_v61 = vadd.f32 %v235_v45, %v229_v52  ;;  %v262_v62 = vadd.f32 %v261_v54, %v255_v53  ;;  %v390_v20 = vld [vmem:[#allocation5 + $0x50] sm:$0xff] }
  0x33   :  { %v190_v55 = vmul.f32 %v1035_v38, %v132_v49  ;;  %210 = vst [vmem:[#allocation7 + $0x80] sm:$0xff] %v132_v49  ;;  %v138_v56 = vadd.f32 %v1038_v41, %v120_v50  ;;  %208 = vst [vmem:[#allocation7 + $0x40] sm:$0xff] %v120_v50  ;;  %v150_v58 = vmul.f32 %v1042_v43, %v132_v49  ;;  %v1071_v23 = vld [vmem:[#allocation2 + $0xe] ss:$0 sm:$0xff] }
  0x34   :  { %v164_v8 = vmul.f32 %v1058_v59, %v126_v36  ;;  %v170_v12 = vmul.f32 %v1060_v60, %v132_v49  ;;  %v242_v14 = vadd.f32 %v1008_v13, %v236_v61  ;;  %v268_v15 = vadd.f32 %v1023_v25, %v262_v62  ;;  %v1092_v61 = vld [vmem:[#allocation5 + $0x18] sm:$0xff] }
  0x35   :  { %v191_v1 = vadd.f32 %v190_v55, %v184_v48  ;;  %v197_v2 = vmul.f32 %v1051_v51, %v138_v56  ;;  %211 = vst [vmem:[#allocation7 + $0xa0] sm:$0xff] %v138_v56  ;;  %v151_v22 = vadd.f32 %v150_v58, %v144_v57  ;;  %v281_v26 = vadd.f32 %v280_v0, %v274_v63  ;;  %v1094_v62 = vld [vmem:[#allocation5 + $0x38] sm:$0xff] }
  0x36   :  { %v157_v29 = vmul.f32 %v1065_v6, %v138_v56  ;;  %v300_v31 = vadd.f32 %v1021_v24, %v242_v14  ;;  %380 = vst [vmem:[#allocation7 + $0x8] sm:$0xff] %v242_v14  ;;  %v306_v33 = vadd.f32 %v1029_v30, %v268_v15  ;;  %381 = vst [vmem:[#allocation7 + $0x28] sm:$0xff] %v268_v15 }
  0x37   :  { %v198_v21 = vadd.f32 %v197_v2, %v191_v1  ;;  %v288_v36 = vadd.f32 %v287_v27, %v281_v26  ;;  %v402_v37 = vmul.f32 %v995_v4, %v389_v16  ;;  %v409_v39 = vmul.f32 %v997_v5, %v390_v20 }
  0x38   :  { %v171_v40 = vadd.f32 %v170_v12, %v164_v8  ;;  %v177_v44 = vmul.f32 %v1071_v23, %v138_v56  ;;  %v358_v35 = vmul.f32 %v1027_v28, %v300_v31  ;;  %383 = vst [vmem:[#allocation7 + $0x68] sm:$0xff] %v300_v31  ;;  %v364_v45 = vmul.f32 %v1035_v38, %v306_v33 }
  0x39   :  { %863 = vrcp.f32 %v198_v21  ;;  %384 = vst [vmem:[#allocation7 + $0x88] sm:$0xff] %v306_v33  ;;  %v294_v46 = vadd.f32 %v1031_v32, %v288_v36  ;;  %v318_v47 = vmul.f32 %v1040_v42, %v300_v31  ;;  %v324_v48 = vmul.f32 %v1042_v43, %v306_v33  ;;  %v564_v21 = vld [vmem:[#allocation5 + $0x58] sm:$0xff] }
  0x3a   :  { %v403_v49 = vadd.f32 %v402_v37, %v396_v34  ;;  %v338_v50 = vmul.f32 %v1058_v59, %v300_v31  ;;  %v344_v52 = vmul.f32 %v1060_v60, %v306_v33  ;;  %v422_v53 = vmul.f32 %v1002_v9, %v388_v7 }
  0x3b   :  { %v428_v54 = vmul.f32 %v1004_v10, %v389_v16  ;;  %v365_v55 = vadd.f32 %v364_v45, %v358_v35  ;;  %v312_v56 = vadd.f32 %v1038_v41, %v294_v46  ;;  %382 = vst [vmem:[#allocation7 + $0x48] sm:$0xff] %v294_v46  ;;  %v435_v58 = vmul.f32 %v1006_v11, %v390_v20 }
  0x3c   :  { %v410_v57 = vadd.f32 %v409_v39, %v403_v49  ;;  %v448_v0 = vmul.f32 %v1013_v17, %v388_v7  ;;  %v454_v1 = vmul.f32 %v1015_v18, %v389_v16  ;;  %v461_v2 = vmul.f32 %v1017_v19, %v390_v20 }
  0x3d   :  { %v429_v63 = vadd.f32 %v428_v54, %v422_v53  ;;  %v158_v8 = vadd.f32 %v157_v29, %v151_v22  ;;  %v178_v12 = vadd.f32 %v177_v44, %v171_v40  ;;  %v371_v14 = vmul.f32 %v1051_v51, %v312_v56  ;;  %385 = vst [vmem:[#allocation7 + $0xa8] sm:$0xff] %v312_v56 }
  0x3e   :  { %v416_v15 = vadd.f32 %v1008_v13, %v410_v57  ;;  %v455_v27 = vadd.f32 %v454_v1, %v448_v0  ;;  %v570_v31 = vmul.f32 %v993_v3, %v1092_v61  ;;  %v576_v7 = vmul.f32 %v995_v4, %v1094_v62 }
  0x3f   :  { %v436_v26 = vadd.f32 %v435_v58, %v429_v63  ;;  %v372_v33 = vadd.f32 %v371_v14, %v365_v55  ;;  %v325_v16 = vadd.f32 %v324_v48, %v318_v47  ;;  %v345_v34 = vadd.f32 %v344_v52, %v338_v50 }
  0x40   :  { %v474_v20 = vadd.f32 %v1021_v24, %v416_v15  ;;  %554 = vst [vmem:[#allocation7 + $0x10] sm:$0xff] %v416_v15  ;;  %v462_v29 = vadd.f32 %v461_v2, %v455_v27  ;;  %v577_v36 = vadd.f32 %v576_v7, %v570_v31  ;;  %v583_v37 = vmul.f32 %v997_v5, %v564_v21 }
  0x41   :  { %v442_v22 = vadd.f32 %v1023_v25, %v436_v26  ;;  %v331_v40 = vmul.f32 %v1065_v6, %v312_v56  ;;  %865 = vrcp.f32 %v372_v33  ;;  %v351_v3 = vmul.f32 %v1071_v23, %v312_v56 }
  0x42   :  { %v532_v4 = vmul.f32 %v1027_v28, %v474_v20  ;;  %557 = vst [vmem:[#allocation7 + $0x70] sm:$0xff] %v474_v20  ;;  %v468_v46 = vadd.f32 %v1031_v32, %v462_v29  ;;  %v584_v47 = vadd.f32 %v583_v37, %v577_v36  ;;  %v596_v5 = vmul.f32 %v1002_v9, %v1092_v61 }
  0x43   :  { %v864_v39 = vpop.eup %863  ;;  %v480_v45 = vadd.f32 %v1029_v30, %v442_v22  ;;  %555 = vst [vmem:[#allocation7 + $0x30] sm:$0xff] %v442_v22  ;;  %v602_v48 = vmul.f32 %v1004_v10, %v1094_v62  ;;  %v609_v49 = vmul.f32 %v1006_v11, %v564_v21  ;;  %v332_v10 = vadd.f32 %v331_v40, %v325_v16 }
  0x44   :  { %v200_v44 = vmul.f32 %v864_v39, %v158_v8  ;;  %v203_v35 = vmul.f32 %v864_v39, %v178_v12  ;;  %v486_v54 = vadd.f32 %v1038_v41, %v468_v46  ;;  %556 = vst [vmem:[#allocation7 + $0x50] sm:$0xff] %v468_v46  ;;  %v590_v55 = vadd.f32 %v1008_v13, %v584_v47 }
  0x45   :  { %v538_v53 = vmul.f32 %v1035_v38, %v480_v45  ;;  %558 = vst [vmem:[#allocation7 + $0x90] sm:$0xff] %v480_v45  ;;  %v603_v56 = vadd.f32 %v602_v48, %v596_v5  ;;  %v352_v0 = vadd.f32 %v351_v3, %v345_v34  ;;  %v492_v11 = vmul.f32 %v1040_v42, %v474_v20 }
  0x46   :  { %v201_v50 = vmul.f32 0.008928572, %v200_v44  ;;  %v204_v52 = vmul.f32 0.008928572, %v203_v35  ;;  %v545_v9 = vmul.f32 %v1051_v51, %v486_v54  ;;  %559 = vst [vmem:[#allocation7 + $0xb0] sm:$0xff] %v486_v54  ;;  %v498_v1 = vmul.f32 %v1042_v43, %v480_v45  ;;  %728 = vst [vmem:[#allocation7 + $0x18] sm:$0xff] %v590_v55 }
  0x47   :  { %v539_v63 = vadd.f32 %v538_v53, %v532_v4  ;;  %v648_v8 = vadd.f32 %v1021_v24, %v590_v55  ;;  %v610_v13 = vadd.f32 %v609_v49, %v603_v56  ;;  %v622_v12 = vmul.f32 %v1013_v17, %v1092_v61 }
  0x48   :  { %v778_v57 = vadd.f32 -1.0, %v201_v50  ;;  %v779_v58 = vadd.f32 -1.0, %v204_v52  ;;  %v512_v14 = vmul.f32 %v1058_v59, %v474_v20  ;;  %v518_v15 = vmul.f32 %v1060_v60, %v480_v45 }
  0x49   :  { %v546_v2 = vadd.f32 %v545_v9, %v539_v63  ;;  %v628_v26 = vmul.f32 %v1015_v18, %v1094_v62  ;;  %v635_v27 = vmul.f32 %v1017_v19, %v564_v21  ;;  %731 = vst [vmem:[#allocation7 + $0x78] sm:$0xff] %v648_v8  ;;  %v616_v31 = vadd.f32 %v1023_v25, %v610_v13 }
  0x4a   :  { %212 = vst [vmem:[#allocation7 + $0xc0] sm:$0xff] %v778_v57  ;;  %213 = vst [vmem:[#allocation7 + $0xe0] sm:$0xff] %v779_v58  ;;  %v499_v33 = vadd.f32 %v498_v1, %v492_v11  ;;  %v505_v17 = vmul.f32 %v1065_v6, %v486_v54  ;;  %v519_v20 = vadd.f32 %v518_v15, %v512_v14 }
  0x4b   :  { %867 = vrcp.f32 %v546_v2  ;;  %v866_v7 = vpop.eup %865  ;;  %v629_v24 = vadd.f32 %v628_v26, %v622_v12  ;;  %v654_v61 = vadd.f32 %v1029_v30, %v616_v31  ;;  %729 = vst [vmem:[#allocation7 + $0x38] sm:$0xff] %v616_v31  ;;  %v525_v22 = vmul.f32 %v1071_v23, %v486_v54 }
  0x4c   :  { %v374_v16 = vmul.f32 %v866_v7, %v332_v10  ;;  %v377_v34 = vmul.f32 %v866_v7, %v352_v0  ;;  %v706_v18 = vmul.f32 %v1027_v28, %v648_v8  ;;  %v506_v39 = vadd.f32 %v505_v17, %v499_v33 }
  0x4d   :  { %v636_v19 = vadd.f32 %v635_v27, %v629_v24  ;;  %v712_v25 = vmul.f32 %v1035_v38, %v654_v61  ;;  %732 = vst [vmem:[#allocation7 + $0x98] sm:$0xff] %v654_v61  ;;  %v526_v40 = vadd.f32 %v525_v22, %v519_v20  ;;  %v666_v45 = vmul.f32 %v1040_v42, %v648_v8 }
  0x4e   :  { %v375_v62 = vmul.f32 0.008928572, %v374_v16  ;;  %v378_v21 = vmul.f32 0.008928572, %v377_v34  ;;  %v686_v46 = vmul.f32 %v1058_v59, %v648_v8  ;;  %v692_v47 = vmul.f32 %v1060_v60, %v654_v61 }
  0x4f   :  { %v642_v29 = vadd.f32 %v1031_v32, %v636_v19  ;;  %v713_v3 = vadd.f32 %v712_v25, %v706_v18  ;;  %v672_v32 = vmul.f32 %v1042_v43, %v654_v61 }
  0x50   :  { %v804_v36 = vadd.f32 -1.0, %v375_v62  ;;  %v805_v37 = vadd.f32 -1.0, %v378_v21  ;;  %v693_v52 = vadd.f32 %v692_v47, %v686_v46 }
  0x51   :  { %v660_v30 = vadd.f32 %v1038_v41, %v642_v29  ;;  %730 = vst [vmem:[#allocation7 + $0x58] sm:$0xff] %v642_v29  ;;  %v673_v50 = vadd.f32 %v672_v32, %v666_v45 }
  0x52   :  { %386 = vst [vmem:[#allocation7 + $0xc8] sm:$0xff] %v804_v36  ;;  %387 = vst [vmem:[#allocation7 + $0xe8] sm:$0xff] %v805_v37 }
  0x53   :  { %v719_v28 = vmul.f32 %v1051_v51, %v660_v30  ;;  %733 = vst [vmem:[#allocation7 + $0xb8] sm:$0xff] %v660_v30  ;;  %v679_v51 = vmul.f32 %v1065_v6, %v660_v30  ;;  %v699_v53 = vmul.f32 %v1071_v23, %v660_v30 }
  0x55   :  { %v868_v4 = vpop.eup %867  ;;  %v720_v38 = vadd.f32 %v719_v28, %v713_v3  ;;  %v680_v42 = vadd.f32 %v679_v51, %v673_v50  ;;  %v700_v54 = vadd.f32 %v699_v53, %v693_v52 }
  0x56   :  { %v548_v44 = vmul.f32 %v868_v4, %v506_v39  ;;  %v551_v35 = vmul.f32 %v868_v4, %v526_v40 }
  0x57   :  { %869 = vrcp.f32 %v720_v38 }
  0x58   :  { %v549_v5 = vmul.f32 0.008928572, %v548_v44  ;;  %v552_v41 = vmul.f32 0.008928572, %v551_v35 }
  0x5a   :  { %v830_v48 = vadd.f32 -1.0, %v549_v5  ;;  %v831_v49 = vadd.f32 -1.0, %v552_v41 }
  0x5c   :  { %560 = vst [vmem:[#allocation7 + $0xd0] sm:$0xff] %v830_v48  ;;  %561 = vst [vmem:[#allocation7 + $0xf0] sm:$0xff] %v831_v49 }
  0x61   :  { %v870_v43 = vpop.eup %869 }
  0x62   :  { %v722_v55 = vmul.f32 %v870_v43, %v680_v42  ;;  %v725_v59 = vmul.f32 %v870_v43, %v700_v54 }
  0x64   :  { %v723_v60 = vmul.f32 0.008928572, %v722_v55  ;;  %v726_v56 = vmul.f32 0.008928572, %v725_v59 }
  0x66   :  { %v856_v57 = vadd.f32 -1.0, %v723_v60  ;;  %v857_v58 = vadd.f32 -1.0, %v726_v56 }
  0x68   :  { %734 = vst [vmem:[#allocation7 + $0xd8] sm:$0xff] %v856_v57  ;;  %735 = vst [vmem:[#allocation7 + $0xf8] sm:$0xff] %v857_v58 }
  0x69   :  { %926 = shalt.err (!%p923_p6)
}
  0x6a   :  { %s927_s10 = scalar_lea.hbm %s1164_s2, 4096 }
  0x6b   :  { %p928_p7 = scmp.ne.s32.totalorder %s1164_s2, %s927_s10  ;;  %p931_p8 = scmp.lt.u32.totalorder %s927_s10, %s1164_s2 }
  0x6d   :  { %p933_p9 = pnand %p931_p8, %p928_p7 }
  0x6f   :  { %936 = shalt.err (!%p933_p9)
}
  0x70   :  { %747 = dma.vmem_to_hbm [thread:$0]  %s742_s6, 4096, %s1164_s2, [#allocation4], %s944_s19, %s944_s19, %s945_s20  }
  0x71   :  { %941 = dma.done.wait [#allocation4], 4096  }
  0x72   :  { %942 = vsyncadd [#allocation4], 4294963200 }
  0x73   :  { %751 = vsyncpa [#allocation3], 1 }
  0x74   :  { %752 = vsyncpa [#allocation6], 1 }
  0x75   :  { %753 = vsyncpa [#allocation4], 1 }

</bundles_post_ra>
